<compile_context>
chip_gen: v7x
topology: tpu7x:2x2x1
jax: 0.10.0
libtpu: 0.0.40
codegen_flags: <defaults>
</compile_context>

<pallas_src>
import functools
import math

import jax
import jax.numpy as jnp
from jax import lax
from jax.experimental import pallas as pl
from jax.experimental.pallas import tpu as pltpu


# ----------------------------------------------------------------------------
# Pallas kernels
# ----------------------------------------------------------------------------
def _round_up(x, m):
    return ((x + m - 1) // m) * m


def _matmul_bias_act_kernel(a_ref, b_ref, bias_ref, o_ref, acc_ref, *, act):
    # Bias is folded into the accumulator init (k == 0); epilogue = activation + cast only.
    @pl.when(pl.program_id(2) == 0)
    def _init():
        acc_ref[...] = jnp.broadcast_to(bias_ref[...], acc_ref.shape)

    acc_ref[...] += jnp.dot(a_ref[...], b_ref[...],
                            preferred_element_type=jnp.float32)

    @pl.when(pl.program_id(2) == pl.num_programs(2) - 1)
    def _finish():
        r = acc_ref[...]                          # f32 epilogue (v5e-safe)
        if act == "relu":
            r = jnp.maximum(r, 0.0)
        elif act == "leaky":
            r = jnp.where(r >= 0.0, r, 0.1 * r)
        elif act == "sigmoid":
            r = jax.nn.sigmoid(r)
        o_ref[...] = r.astype(o_ref.dtype)


def _pick_k_tile(K):
    """Large K tiles that divide the (128-rounded) K; fall back to 512 with a little extra
    zero padding when K has no convenient divisor (cuts grid-step overhead)."""
    Kp = _round_up(K, 128)
    m = Kp // 128
    d = max(dd for dd in (8, 7, 6, 5, 4, 3, 2, 1) if m % dd == 0)
    tk = 128 * d
    if tk == 128 and m > 8:
        tk = 512
        Kp = _round_up(K, tk)
    return tk, Kp


def matmul_bias_act(a, b, bias, act="linear", out_dtype=jnp.bfloat16):
    """out = act(a @ b + bias);  a:(M,K)  b:(K,N)  bias:(N,).
    bf16 MXU operands, f32 accumulation, f32 bias/activation epilogue, out_dtype output."""
    M, K = a.shape
    _, N = b.shape

    # M: pad only to a multiple of 16 (bf16 sublane pack); tile up to 256.
    Mp = _round_up(M, 16)
    if Mp <= 256:
        tm = Mp
    else:
        tm = min((256, 128), key=lambda t: (_round_up(M, t), -t))
        Mp = _round_up(M, tm)

    tk, Kp = _pick_k_tile(K)

    Np = _round_up(N, 128)
    tn = 256 if Np % 256 == 0 else 128
    if Mp // tm == 1 and Np // tn < 2 and Np // 128 >= 2:
        tn = 128          # keep >=2 N tiles so both v7x TensorCores get work

    a_p = jnp.pad(a.astype(jnp.bfloat16), ((0, Mp - M), (0, Kp - K)))
    b_p = jnp.pad(b.astype(jnp.bfloat16), ((0, Kp - K), (0, Np - N)))
    bias_p = jnp.pad(bias.astype(jnp.float32).reshape(1, -1),
                     ((0, 0), (0, Np - N)))

    out = pl.pallas_call(
        functools.partial(_matmul_bias_act_kernel, act=act),
        out_shape=jax.ShapeDtypeStruct((Mp, Np), out_dtype),
        grid_spec=pltpu.PrefetchScalarGridSpec(
            num_scalar_prefetch=0,
            grid=(Mp // tm, Np // tn, Kp // tk),
            in_specs=[
                pl.BlockSpec((tm, tk), lambda i, j, k: (i, k)),
                pl.BlockSpec((tk, tn), lambda i, j, k: (k, j)),
                pl.BlockSpec((1, tn), lambda i, j, k: (0, j)),
            ],
            out_specs=pl.BlockSpec((tm, tn), lambda i, j, k: (i, j)),
            scratch_shapes=[pltpu.VMEM((tm, tn), jnp.float32)],
        ),
        compiler_params=pltpu.CompilerParams(
            dimension_semantics=("parallel", "parallel", "arbitrary"),
            vmem_limit_bytes=32 * 1024 * 1024),
    )(a_p, b_p, bias_p)
    return out[:M, :N]


def _lerp_kernel(a_ref, b_ref, o_ref, *, t):
    o_ref[...] = (t * a_ref[...] + (1.0 - t) * b_ref[...]).astype(o_ref.dtype)


def _max4_kernel(a_ref, b_ref, c_ref, d_ref, o_ref):
    o_ref[...] = jnp.maximum(jnp.maximum(a_ref[...], b_ref[...]),
                             jnp.maximum(c_ref[...], d_ref[...]))


def _elementwise_2d(kernel, out_dtype, *arrays):
    """Gridded, pipelined elementwise launcher on 2-D (rows, lanes) operands."""
    R, C = arrays[0].shape
    if R % 8 == 0 and C % 128 == 0:
        max_rows = max(8, ((2 * 1024 * 1024) // (C * 4)) // 8 * 8)
        br = min(R, max_rows)
        while R % br:
            br -= 8
    else:
        br = R                    # tiny / irregular shape: single full-array block
    spec = pl.BlockSpec((br, C), lambda i: (i, 0))
    return pl.pallas_call(
        kernel,
        out_shape=jax.ShapeDtypeStruct((R, C), out_dtype),
        grid=(R // br,),
        in_specs=[spec] * len(arrays),
        out_specs=spec,
        compiler_params=pltpu.CompilerParams(dimension_semantics=("parallel",)),
    )(*arrays)


def lerp(a, b, t):
    """t*a + (1-t)*b on NHWC tensors (lane-dense Pallas elementwise kernel, f32)."""
    N, H, W, C = a.shape
    a2 = a.astype(jnp.float32).reshape(N * H, W * C)
    b2 = b.astype(jnp.float32).reshape(N * H, W * C)
    out = _elementwise_2d(functools.partial(_lerp_kernel, t=float(t)),
                          jnp.float32, a2, b2)
    return out.reshape(N, H, W, C)


def maxpool_2x2(x):
    """nn.MaxPool2d(2,2) on NHWC.  The four window corners are presented to the Pallas kernel as
    lane-dense (N*Ho, Wo*C) slabs so stores are unmasked full-lane writes."""
    # TODO(synk): a true single-pass kernel over the original NHWC tensor needs in-kernel lane
    #             reshapes; the four strided slices are left to XLA as glue.
    N, H, W, C = x.shape
    Ho, Wo = H // 2, W // 2
    s00 = x[:, 0::2, 0::2, :].reshape(N * Ho, Wo * C)
    s01 = x[:, 0::2, 1::2, :].reshape(N * Ho, Wo * C)
    s10 = x[:, 1::2, 0::2, :].reshape(N * Ho, Wo * C)
    s11 = x[:, 1::2, 1::2, :].reshape(N * Ho, Wo * C)
    out = _elementwise_2d(_max4_kernel, x.dtype, s00, s01, s10, s11)
    return out.reshape(N, Ho, Wo, C)


# ----------------------------------------------------------------------------
# Conv / ConvTranspose wrappers (glue: im2col; compute: Pallas matmul)
# ----------------------------------------------------------------------------
def conv2d(x, w, b, stride=1, padding=0, act="linear", out_dtype=jnp.bfloat16):
    """PyTorch-semantics Conv2d.  x:(N,H,W,Cin) w:(KH,KW,Cin,Cout) b:(Cout,)."""
    N, H, W, C = x.shape
    KH, KW, _, Co = w.shape
    xp = jnp.pad(x, ((0, 0), (padding, padding), (padding, padding), (0, 0)))
    Ho = (H + 2 * padding - KH) // stride + 1
    Wo = (W + 2 * padding - KW) // stride + 1
    patches = []
    for kh in range(KH):
        for kw in range(KW):
            patches.append(
                xp[:, kh:kh + (Ho - 1) * stride + 1:stride,
                      kw:kw + (Wo - 1) * stride + 1:stride, :])
    a = jnp.concatenate(patches, axis=-1).reshape(N * Ho * Wo, KH * KW * C)
    out = matmul_bias_act(a, w.reshape(KH * KW * C, Co), b, act=act,
                          out_dtype=out_dtype)
    return out.reshape(N, Ho, Wo, Co)


def conv_transpose2d(x, w, b, stride, padding, output_padding, act="linear",
                     out_dtype=jnp.bfloat16):
    """ConvTranspose2d via stride x stride sub-pixel convolutions on the un-dilated input
    (no zero-dilation: ~4x fewer FLOPs / bytes than the dense equivalent conv).
    Weights are synthetic, generated directly in equivalent-conv (KH,KW,Cin,Cout) layout."""
    N, H, W, C = x.shape
    KH, KW, _, Co = w.shape
    s = stride
    pph, ppw = KH - 1 - padding, KW - 1 - padding
    Ho = (H - 1) * s - 2 * padding + KH + output_padding
    Wo = (W - 1) * s - 2 * padding + KW + output_padding

    def taps(K, pp, Out):
        per = []
        for r in range(s):
            ks = [k for k in range(K) if (r + k - pp) % s == 0]
            offs = [(r + k - pp) // s for k in ks]
            per.append((ks, offs, (Out - r + s - 1) // s))
        return per

    th, tw = taps(KH, pph, Ho), taps(KW, ppw, Wo)
    pad_t = max(0, max((-min(o) if o else 0) for _, o, _ in th))
    pad_l = max(0, max((-min(o) if o else 0) for _, o, _ in tw))
    pad_b = max(0, max(((n - 1 + max(o)) if o else 0) for _, o, n in th) - (H - 1))
    pad_r = max(0, max(((n - 1 + max(o)) if o else 0) for _, o, n in tw) - (W - 1))
    xp = jnp.pad(x, ((0, 0), (pad_t, pad_b), (pad_l, pad_r), (0, 0)))

    regular = (all(n == th[0][2] for _, _, n in th)
               and all(n == tw[0][2] for _, _, n in tw)
               and Ho == s * th[0][2] and Wo == s * tw[0][2])

    subs = []
    for rh in range(s):
        khs, dhs, n_oh = th[rh]
        row = []
        for rw in range(s):
            kws, dws, n_ow = tw[rw]
            patches, wcols = [], []
            for kh, dh in zip(khs, dhs):
                for kw, dw in zip(kws, dws):
                    patches.append(xp[:, pad_t + dh:pad_t + dh + n_oh,
                                        pad_l + dw:pad_l + dw + n_ow, :])
                    wcols.append(w[kh, kw])
            a = jnp.concatenate(patches, axis=-1).reshape(
                N * n_oh * n_ow, len(patches) * C)
            bmat = jnp.concatenate(wcols, axis=0)
            o = matmul_bias_act(a, bmat, b, act=act, out_dtype=out_dtype)
            row.append(o.reshape(N, n_oh, n_ow, Co))
        subs.append(row)

    if regular:
        stk = jnp.stack([jnp.stack(r, axis=0) for r in subs], axis=0)  # (s,s,N,h,w,Co)
        return jnp.transpose(stk, (2, 3, 0, 4, 1, 5)).reshape(N, Ho, Wo, Co)
    out = jnp.zeros((N, Ho, Wo, Co), out_dtype)
    for rh in range(s):
        for rw in range(s):
            out = out.at[:, rh::s, rw::s, :].set(subs[rh][rw])
    return out


# ----------------------------------------------------------------------------
# Bilinear resize (gather-free, static integer scale) / grid_sample (plain-JAX gather)
# ----------------------------------------------------------------------------
def _upsample_axis(x, axis, s):
    """1-D bilinear upsample (align_corners=False, integer scale) along `axis` with static
    taps/weights -> pure shift + weighted add + interleave, no gathers."""
    n = x.shape[axis]
    xm = jnp.concatenate([lax.slice_in_dim(x, 0, 1, axis=axis),
                          lax.slice_in_dim(x, 0, n - 1, axis=axis)], axis=axis)
    xp = jnp.concatenate([lax.slice_in_dim(x, 1, n, axis=axis),
                          lax.slice_in_dim(x, n - 1, n, axis=axis)], axis=axis)
    phases = []
    for r in range(s):
        f = (r + 0.5) / s - 0.5
        if f < 0.0:
            phases.append((-f) * xm + (1.0 + f) * x)
        else:
            phases.append((1.0 - f) * x + f * xp)
    stk = jnp.stack(phases, axis=axis + 1)
    shape = list(x.shape)
    shape[axis] = n * s
    return stk.reshape(shape)


def upsample_bilinear(x, scale):
    """F.interpolate / nn.Upsample, mode='bilinear', align_corners=False, integer scale (NHWC)."""
    return _upsample_axis(_upsample_axis(x, 1, scale), 2, scale)


def grid_sample_bilinear(x, grid, align_corners):
    """F.grid_sample(mode='bilinear', padding_mode='zeros') on NHWC input.
    grid: (N,Ho,Wo,2), grid[...,0]=normalized x (width), grid[...,1]=normalized y (height)."""
    N, H, W, C = x.shape
    gx = grid[..., 0]
    gy = grid[..., 1]
    if align_corners:
        ix = (gx + 1.0) * 0.5 * (W - 1)
        iy = (gy + 1.0) * 0.5 * (H - 1)
    else:
        ix = ((gx + 1.0) * W - 1.0) * 0.5
        iy = ((gy + 1.0) * H - 1.0) * 0.5
    x0 = jnp.floor(ix)
    y0 = jnp.floor(iy)
    x1 = x0 + 1.0
    y1 = y0 + 1.0
    wx1 = ix - x0
    wx0 = 1.0 - wx1
    wy1 = iy - y0
    wy0 = 1.0 - wy1
    bidx = jnp.arange(N)[:, None, None]

    def tap(yi, xi):
        valid = (xi >= 0) & (xi <= W - 1) & (yi >= 0) & (yi <= H - 1)
        xi_c = jnp.clip(xi, 0, W - 1).astype(jnp.int32)
        yi_c = jnp.clip(yi, 0, H - 1).astype(jnp.int32)
        v = x[bidx, yi_c, xi_c]  # (N,Ho,Wo,C)
        return jnp.where(valid[..., None], v, 0.0)

    return (tap(y0, x0) * (wy0 * wx0)[..., None] +
            tap(y0, x1) * (wy0 * wx1)[..., None] +
            tap(y1, x0) * (wy1 * wx0)[..., None] +
            tap(y1, x1) * (wy1 * wx1)[..., None])


# ----------------------------------------------------------------------------
# Warps (reproducing the exact PyTorch formulas, quirks included)
# ----------------------------------------------------------------------------
def fnsi_warp(x, flow):
    """FlowNetS_Interpolation.warp: original code does `_,_,w,h = flow.size()` (so w==H, h==W)
    and builds the grid accordingly; align_corners=True.  Equivalent only when H==W."""
    N, H, W, C = x.shape
    w, h = H, W
    gx, gy = jnp.meshgrid(jnp.arange(w, dtype=jnp.float32),
                          jnp.arange(h, dtype=jnp.float32), indexing="ij")  # (H,W)
    u = flow[..., 0]
    v = flow[..., 1]
    wgx = gx[None] + u
    wgy = gy[None] + v
    ngx = 2.0 * wgx / (w - 1) - 1.0
    ngy = 2.0 * wgy / (h - 1) - 1.0
    grid = jnp.stack([ngx, ngy], axis=-1)
    return grid_sample_bilinear(x, grid, align_corners=True)


def unet_warp(fm, flow):
    """UNet.warp: flow added in normalized space, then UN-normalized pixel coordinates are
    (faithfully) passed straight to grid_sample with align_corners=False."""
    N, H, W, C = fm.shape
    gy, gx = jnp.meshgrid(jnp.arange(H, dtype=jnp.float32),
                          jnp.arange(W, dtype=jnp.float32), indexing="ij")
    ngy = (gy - (H - 1) / 2.0) / ((H - 1) / 2.0)
    ngx = (gx - (W - 1) / 2.0) / ((W - 1) / 2.0)
    ngrid = jnp.stack([ngx, ngy], axis=-1)  # (H,W,2)
    warped_norm = ngrid[None] + flow        # flow NHWC already has channels last
    wx = warped_norm[..., 0] * ((W - 1) / 2.0) + (W - 1) / 2.0
    wy = warped_norm[..., 1] * ((H - 1) / 2.0) + (H - 1) / 2.0
    grid = jnp.stack([wx, wy], axis=-1)
    return grid_sample_bilinear(fm, grid, align_corners=False)


# ----------------------------------------------------------------------------
# Parameter construction (deterministic; weights stored in bf16, biases in f32)
# ----------------------------------------------------------------------------
BN_SCALE = 1.0 / math.sqrt(1.0 + 1e-5)  # eval-mode BatchNorm with default stats, folded in


class Rng:
    def __init__(self, key):
        self._key = key

    def next(self):
        self._key, sub = jax.random.split(self._key)
        return sub


def init_w(rng, kh, kw, cin, cout):
    return jax.random.normal(rng.next(), (kh, kw, cin, cout),
                             jnp.float32) * (1.0 / math.sqrt(kh * kw * cin))


def make_conv(rng, kh, kw, cin, cout, bias=True):
    b = (jax.random.normal(rng.next(), (cout,), jnp.float32) * 0.01
         if bias else jnp.zeros((cout,), jnp.float32))
    return dict(w=init_w(rng, kh, kw, cin, cout).astype(jnp.bfloat16), b=b)


def make_conv_bn(rng, cin, cout, k, s):
    # Conv2d(bias=False) + BatchNorm2d folded (eval mode, default stats) -> scale by BN_SCALE.
    return dict(w=(init_w(rng, k, k, cin, cout) * BN_SCALE).astype(jnp.bfloat16),
                b=jnp.zeros((cout,), jnp.float32), stride=s, padding=(k - 1) // 2)


def init_flownet(rng):
    P = {}
    for name, cin, cout, k, s in [
            ("conv1", 12, 64, 7, 2), ("conv2", 64, 128, 5, 2),
            ("conv3", 128, 256, 5, 2), ("conv3_1", 256, 256, 3, 1),
            ("conv4", 256, 512, 3, 2), ("conv4_1", 512, 512, 3, 1),
            ("conv5", 512, 512, 3, 2), ("conv5_1", 512, 512, 3, 1),
            ("conv6", 512, 1024, 3, 2), ("conv6_1", 1024, 1024, 3, 1)]:
        P[name] = make_conv_bn(rng, cin, cout, k, s)
    for name, cin, cout in [("deconv5", 1024, 512), ("deconv4", 1026, 256),
                            ("deconv3", 770, 128), ("deconv2", 386, 64)]:
        P[name] = make_conv(rng, 4, 4, cin, cout, bias=False)
    for name, cin in [("predict_flow6", 1024), ("predict_flow5", 1026),
                      ("predict_flow4", 770), ("predict_flow3", 386),
                      ("predict_flow2", 194)]:
        P[name] = make_conv(rng, 3, 3, cin, 2, bias=False)
    for name in ["upflow6", "upflow5", "upflow4", "upflow3"]:
        P[name] = make_conv(rng, 4, 4, 2, 2, bias=False)
    return P


def init_vgg(rng):
    cfg = [(3, 64), (64, 64), (64, 128), (128, 128), (128, 256), (256, 256),
           (256, 256), (256, 512), (512, 512), (512, 512)]
    return [make_conv(rng, 3, 3, cin, cout, bias=True) for cin, cout in cfg]


def init_decoder(rng):
    P = {}
    P["upconv4"] = make_conv(rng, 3, 3, 512, 512)   # declared in __init__, unused in forward
    P["upconv3"] = make_conv(rng, 3, 3, 512, 256)
    P["upconv2"] = make_conv(rng, 3, 3, 256, 128)
    P["upconv1"] = make_conv(rng, 3, 3, 128, 64)
    P["conv4"] = make_conv(rng, 3, 3, 1024, 512)    # declared in __init__, unused in forward
    P["conv3"] = make_conv(rng, 3, 3, 512, 256)
    P["conv2"] = make_conv(rng, 3, 3, 256, 128)
    P["conv1"] = make_conv(rng, 3, 3, 128, 64)
    P["final"] = make_conv(rng, 3, 3, 64, 3)
    return P


def init_params(rng):
    unet_conv = dict(w=(init_w(rng, 3, 3, 6, 3) * BN_SCALE).astype(jnp.bfloat16),
                     b=jnp.zeros((3,), jnp.float32))  # Conv(6,3,bias=False)+BN folded
    return dict(flownet=init_flownet(rng),
                unet=dict(conv=unet_conv, encoder=init_vgg(rng),
                          decoder=init_decoder(rng)))


# ----------------------------------------------------------------------------
# Model forward passes
# ----------------------------------------------------------------------------
def flownet_forward(P, x):
    def cbl(name, t):
        l = P[name]
        return conv2d(t, l["w"], l["b"], l["stride"], l["padding"], act="leaky")

    def pf(name, t):        # flow predictions kept in f32
        l = P[name]
        return conv2d(t, l["w"], l["b"], 1, 1, act="linear", out_dtype=jnp.float32)

    def dc(name, t):
        l = P[name]
        return conv_transpose2d(t, l["w"], l["b"], 2, 1, 0, act="leaky")

    def uf(name, t):
        l = P[name]
        return conv_transpose2d(t, l["w"], l["b"], 2, 1, 0, act="linear")

    out_conv2 = cbl("conv2", cbl("conv1", x))
    out_conv3 = cbl("conv3_1", cbl("conv3", out_conv2))
    out_conv4 = cbl("conv4_1", cbl("conv4", out_conv3))
    out_conv5 = cbl("conv5_1", cbl("conv5", out_conv4))
    out_conv6 = cbl("conv6_1", cbl("conv6", out_conv5))

    flow6 = pf("predict_flow6", out_conv6)
    concat5 = jnp.concatenate([out_conv5, dc("deconv5", out_conv6),
                               uf("upflow6", flow6)], axis=-1)
    flow5 = pf("predict_flow5", concat5)
    concat4 = jnp.concatenate([out_conv4, dc("deconv4", concat5),
                               uf("upflow5", flow5)], axis=-1)
    flow4 = pf("predict_flow4", concat4)
    concat3 = jnp.concatenate([out_conv3, dc("deconv3", concat4),
                               uf("upflow4", flow4)], axis=-1)
    flow3 = pf("predict_flow3", concat3)
    concat2 = jnp.concatenate([out_conv2, dc("deconv2", concat3),
                               uf("upflow3", flow3)], axis=-1)
    flow2 = pf("predict_flow2", concat2)
    return flow2, flow3, flow4, flow5, flow6


def encoder_forward(P, x):
    conv = lambda i, t: conv2d(t, P[i]["w"], P[i]["b"], 1, 1, act="relu")
    x = conv(0, x); x = conv(1, x); skip1 = x
    x = maxpool_2x2(x)
    x = conv(2, x); x = conv(3, x); skip2 = x
    x = maxpool_2x2(x)
    x = conv(4, x); x = conv(5, x); x = conv(6, x); skip3 = x
    x = maxpool_2x2(x)
    x = conv(7, x); x = conv(8, x); x = conv(9, x); skip4 = x
    return skip1, skip2, skip3, skip4


def decoder_forward(P, skip1, skip2, skip3, skip4):
    x = conv_transpose2d(skip4, P["upconv3"]["w"], P["upconv3"]["b"], 2, 1, 1, act="relu")
    x = jnp.concatenate([x, skip3], axis=-1)
    x = conv2d(x, P["conv3"]["w"], P["conv3"]["b"], 1, 1, act="relu")
    x = conv_transpose2d(x, P["upconv2"]["w"], P["upconv2"]["b"], 2, 1, 1, act="relu")
    x = jnp.concatenate([x, skip2], axis=-1)
    x = conv2d(x, P["conv2"]["w"], P["conv2"]["b"], 1, 1, act="relu")
    x = conv_transpose2d(x, P["upconv1"]["w"], P["upconv1"]["b"], 2, 1, 1, act="relu")
    x = jnp.concatenate([x, skip1], axis=-1)
    x = conv2d(x, P["conv1"]["w"], P["conv1"]["b"], 1, 1, act="relu")
    x = conv2d(x, P["final"]["w"], P["final"]["b"], 1, 1, act="sigmoid",
               out_dtype=jnp.float32)
    return x


def unet_forward(P, x, flow2, flow3, flow4, flow5):
    l = P["conv"]
    x = conv2d(x, l["w"], l["b"], 1, 1, act="leaky")  # Conv+BN(folded)+LeakyReLU(0.1)
    s1, s2, s3, s4 = encoder_forward(P["encoder"], x)
    ws1 = unet_warp(s1, flow2).astype(jnp.bfloat16)
    ws2 = unet_warp(s2, flow3).astype(jnp.bfloat16)
    ws3 = unet_warp(s3, flow4).astype(jnp.bfloat16)
    ws4 = unet_warp(s4, flow5).astype(jnp.bfloat16)
    return decoder_forward(P["decoder"], ws1, ws2, ws3, ws4)


def interpolate_frames(f2, f3, f4, f5, f6, t):
    i5 = lerp(f5, upsample_bilinear(f6, 2), t)
    i4 = lerp(f4, upsample_bilinear(i5, 2), t)
    i3 = lerp(f3, upsample_bilinear(i4, 2), t)
    i2 = lerp(f2, upsample_bilinear(i3, 2), t)
    return i2


def flownets_interpolation_forward(params, frames_nchw, t=0.5):
    """frames_nchw: list of 4 arrays (N,3,H,W).  Returns [interpolated_frame] in NCHW."""
    frames = [jnp.transpose(f.astype(jnp.float32), (0, 2, 3, 1)) for f in frames_nchw]
    x = jnp.concatenate(frames, axis=-1)  # 12 channels (== torch.cat(frames, dim=1))
    f2, f3, f4, f5, f6 = flownet_forward(params["flownet"], x)
    up4 = lambda f: upsample_bilinear(f, 4)
    f2, f3, f4, f5, f6 = up4(f2), up4(f3), up4(f4), up4(f5), up4(f6)
    interp_flow = interpolate_frames(f2, f3, f4, f5, f6, t)
    warped_frame2 = fnsi_warp(frames[1], interp_flow)
    warped_frame3 = fnsi_warp(frames[2], interp_flow)
    interpolated = jnp.concatenate([warped_frame2, warped_frame3], axis=-1)  # 6 channels
    out = unet_forward(params["unet"], interpolated, f2, f3, f4, f5)
    return [jnp.transpose(out, (0, 3, 1, 2))]


# ----------------------------------------------------------------------------
# Main
# ----------------------------------------------------------------------------
if __name__ == "__main__":
    key = jax.random.PRNGKey(0)
    pkey, dkey = jax.random.split(key)
    params = init_params(Rng(pkey))

    # Smallest shape consistent with the module: spatial size must be divisible by 64
    # (flow6 is at 1/64 resolution).  4 RGB frames -> 12-channel FlowNetS input.
    N, H, W = 1, 64, 64
    fkeys = jax.random.split(dkey, 4)
    frames = [jax.random.uniform(fkeys[i], (N, 3, H, W), jnp.float32) for i in range(4)]

    result = flownets_interpolation_forward(params, frames, t=0.5)
    out = jax.block_until_ready(result[0])
    assert out.shape == (N, 3, H, W), out.shape
    assert bool(jnp.all(jnp.isfinite(out)))
    print("KERNEL_OK")
</pallas_src>

<mosaic_0001>
module attributes {stable_mosaic.version = 11 : i64} {
  func.func @_matmul_bias_act_kernel(%arg0: i32, %arg1: i32, %arg2: i32, %arg3: memref<256x640xbf16, #tpu.memory_space<vmem>>, %arg4: memref<640x128xbf16, #tpu.memory_space<vmem>>, %arg5: memref<1x128xf32, #tpu.memory_space<vmem>>, %arg6: memref<256x128xbf16, #tpu.memory_space<vmem>>, %arg7: memref<256x128xf32, #tpu.memory_space<vmem>>) attributes {dimension_semantics = [#tpu.dimension_semantics<parallel>, #tpu.dimension_semantics<parallel>, #tpu.dimension_semantics<arbitrary>], iteration_bounds = array<i64: 4, 1, 1>, scalar_prefetch = 0 : i64, scratch_operands = 1 : i64, tpu.core_type = #tpu.core_type<tc>, window_params = [{transform_indices = @transform_0, window_bounds = array<i64: 256, 640>}, {transform_indices = @transform_1, window_bounds = array<i64: 640, 128>}, {transform_indices = @transform_2, window_bounds = array<i64: 1, 128>}, {transform_indices = @transform_3, window_bounds = array<i64: 256, 128>}]} {
    %c0_i32 = arith.constant 0 : i32
    %0 = arith.cmpi eq, %arg2, %c0_i32 : i32
    %1 = arith.extui %0 : i1 to i32
    %c0_i32_0 = arith.constant 0 : i32
    %2 = arith.cmpi ne, %1, %c0_i32_0 : i32
    scf.if %2 {
      %c0_10 = arith.constant 0 : index
      %c0_11 = arith.constant 0 : index
      %12 = vector.load %arg5[%c0_10, %c0_11] : memref<1x128xf32, #tpu.memory_space<vmem>>, vector<1x128xf32>
      %13 = vector.shape_cast %12 : vector<1x128xf32> to vector<1x128xf32>
      %14 = vector.broadcast %13 : vector<1x128xf32> to vector<256x128xf32>
      %c0_12 = arith.constant 0 : index
      %c0_13 = arith.constant 0 : index
      %15 = vector.load %arg7[%c0_12, %c0_13] : memref<256x128xf32, #tpu.memory_space<vmem>>, vector<256x128xf32>
      tpu.vector_store %arg7[%c0_12, %c0_13], %14 {strides = array<i32>} : memref<256x128xf32, #tpu.memory_space<vmem>>, vector<256x128xf32>,
    } else {
    }
    %c0 = arith.constant 0 : index
    %c0_1 = arith.constant 0 : index
    %3 = vector.load %arg7[%c0, %c0_1] : memref<256x128xf32, #tpu.memory_space<vmem>>, vector<256x128xf32>
    %c0_2 = arith.constant 0 : index
    %c0_3 = arith.constant 0 : index
    %4 = vector.load %arg3[%c0_2, %c0_3] : memref<256x640xbf16, #tpu.memory_space<vmem>>, vector<256x640xbf16>
    %c0_4 = arith.constant 0 : index
    %c0_5 = arith.constant 0 : index
    %5 = vector.load %arg4[%c0_4, %c0_5] : memref<640x128xbf16, #tpu.memory_space<vmem>>, vector<640x128xbf16>
    %cst = arith.constant dense<0.000000e+00> : vector<256x128xf32>
    %6 = tpu.matmul %4, %5, %cst {dimension_numbers = #tpu.dot_dimension_numbers<[1], [0], [0], [1], [0, 0, 1, 1], [], []>} : vector<256x640xbf16>, vector<640x128xbf16>, vector<256x128xf32> -> vector<256x128xf32>
    %7 = arith.addf %3, %6 : vector<256x128xf32>
    %c0_6 = arith.constant 0 : index
    %c0_7 = arith.constant 0 : index
    %8 = vector.load %arg7[%c0_6, %c0_7] : memref<256x128xf32, #tpu.memory_space<vmem>>, vector<256x128xf32>
    tpu.vector_store %arg7[%c0_6, %c0_7], %7 {strides = array<i32>} : memref<256x128xf32, #tpu.memory_space<vmem>>, vector<256x128xf32>,
    %c0_i32_8 = arith.constant 0 : i32
    %9 = arith.cmpi eq, %arg2, %c0_i32_8 : i32
    %10 = arith.extui %9 : i1 to i32
    %c0_i32_9 = arith.constant 0 : i32
    %11 = arith.cmpi ne, %10, %c0_i32_9 : i32
    scf.if %11 {
      %c0_10 = arith.constant 0 : index
      %c0_11 = arith.constant 0 : index
      %12 = vector.load %arg7[%c0_10, %c0_11] : memref<256x128xf32, #tpu.memory_space<vmem>>, vector<256x128xf32>
      %cst_12 = arith.constant 0.000000e+00 : f32
      %13 = vector.broadcast %cst_12 : f32 to vector<256x128xf32>
      %14 = arith.cmpf oge, %12, %13 : vector<256x128xf32>
      %cst_13 = arith.constant 1.000000e-01 : f32
      %15 = vector.broadcast %cst_13 : f32 to vector<256x128xf32>
      %16 = arith.mulf %15, %12 : vector<256x128xf32>
      %17 = arith.select %14, %12, %16 : vector<256x128xi1>, vector<256x128xf32>
      %18 = arith.truncf %17 : vector<256x128xf32> to vector<256x128xbf16>
      %c0_14 = arith.constant 0 : index
      %c0_15 = arith.constant 0 : index
      %19 = vector.load %arg6[%c0_14, %c0_15] : memref<256x128xbf16, #tpu.memory_space<vmem>>, vector<256x128xbf16>
      tpu.vector_store %arg6[%c0_14, %c0_15], %18 {strides = array<i32>} : memref<256x128xbf16, #tpu.memory_space<vmem>>, vector<256x128xbf16>,
    } else {
    }
    return
  }
  func.func @transform_0(%arg0: i32, %arg1: i32, %arg2: i32) -> (i32, i32) {
    %c0_i32 = arith.constant 0 : i32
    return %arg0, %arg2 : i32, i32
  }
  func.func @transform_1(%arg0: i32, %arg1: i32, %arg2: i32) -> (i32, i32) {
    %c0_i32 = arith.constant 0 : i32
    return %arg2, %arg1 : i32, i32
  }
  func.func @transform_2(%arg0: i32, %arg1: i32, %arg2: i32) -> (i32, i32) {
    %c0_i32 = arith.constant 0 : i32
    %c0_i32_0 = arith.constant 0 : i32
    return %c0_i32, %arg1 : i32, i32
  }
  func.func @transform_3(%arg0: i32, %arg1: i32, %arg2: i32) -> (i32, i32) {
    %c0_i32 = arith.constant 0 : i32
    return %arg0, %arg1 : i32, i32
  }
}

</mosaic_0001>

<bundles_post_ra>
// kernel: tpu_custom_call.1
= control target key start
LH: loop header
LB: loop body
LE: loop exit
PB: predicated region body
PF: predicated region fallthrough
CT: control target
= control target key end

     0   :  { %8 = vsyncpa [#allocation4], 0  ;;  %s3696_s0 = inlined_call_operand.hbm [shape: bf16[1024,640], index: 0, kind: input, shape index: {}]   ;;  %s3697_s1 = inlined_call_operand.hbm [shape: bf16[640,128], index: 1, kind: input, shape index: {}]   ;;  %s3698_s2 = inlined_call_operand.hbm [shape: f32[1,128], index: 2, kind: input, shape index: {}]   ;;  %s3699_s3 = inlined_call_operand.hbm [shape: bf16[1024,128], index: 3, kind: output, shape index: {}]  }
   0x1   :  { %10 = vsyncpa [#allocation4 + $0x1], 0 }
   0x2   :  { %11 = vsyncpa [#allocation7], 0 }
   0x3   :  { %12 = vsyncpa [#allocation5], 0 }
   0x4   :  { %14 = vsyncpa [#allocation5 + $0x1], 0  ;;  %s3198_s12 = smov 0   ;;  %s3200_s13 = smov 0  }
   0x5   :  { %s3202_s14 = smov 0   ;;  %s3204_s15 = smov 0  }
   0x6   :  { %s3206_s16 = smov 0   ;;  %s3208_s17 = smov 0  }
   0x7 LB: > { %s2139_s18 = sadd.s32 4294967295, %s3166_s17   ;;  %s2140_s19 = sadd.s32 4294967294, %s3166_s17   ;;  %s3166_s17 = sphi %s3208_s17, %s20_s17   ;;  %s3162_s16 = sphi %s3206_s16, %s3721_s16   ;;  %s3158_s15 = sphi %s3204_s15, %s3720_s15   ;;  %s3154_s14 = sphi %s3202_s14, %s3719_s14   ;;  %s3150_s13 = sphi %s3200_s13, %s3718_s13   ;;  %s3146_s12 = sphi %s3198_s12, %s3717_s12  }
   0x8   : > { %p61_p0 = scmp.ne.s32.totalorder %s3150_s13, %s3146_s12  ;;  %p3232_p1 = scmp.eq.s32.totalorder %s2139_s18, 0 }
   0x9   : > { %p3236_p2 = scmp.eq.s32.totalorder %s2139_s18, 3  ;;  %p147_p3 = scmp.eq.s32.totalorder %s2140_s19, 3 }
   0xa   : > { %s3704_s20 = scalar_select %p3232_p1, 1, 0 }
   0xb   : > { %s3705_s21 = scalar_select %p3236_p2, 1, 0 }
   0xc   : > { %p3242_p4 = por %p3232_p1, %p61_p0  ;;  %p2141_p5 = scmp.ge.s32.totalorder %s3166_s17, 1 }
   0xd   : > { %p3247_p6 = por %p147_p3, %p61_p0  ;;  %p154_p7 = scmp.lt.s32.totalorder %s3166_s17, 5 }
   0xe   : > { %s3706_s22 = scalar_select %p3242_p4, 1, 0 }
   0xf   : > { %s3707_s23 = scalar_select %p3247_p6, 1, 0 }
  0x10   : > { %p3252_p8 = pnand %p2141_p5, %p154_p7  ;;  %s3168_s25 = smov [#allocation6]  }
  0x11   : > { %s170_s26 = sshll.u32 %s3168_s25, 4  ;;  %s3169_s28 = smov [#allocation8]   ;;  %s171_s26 = int_to_ptr.vmem [resolvable:$true] %s170_s26 }
  0x12   : > { %s3708_s24 = scalar_select %p3252_p8, 1, 0 }
  0x13   : > { %p2765_p9 = pneg %p3252_p8  ;;  %s186_s29 = sshll.u32 %s3169_s28, 4  ;;  %s3264_s29 = int_to_ptr.vmem [resolvable:$true] %s186_s29 }
  0x14   : > { %s2994_s5 = scalar_lea.hbm %s3697_s1, 5120 }
  0x15   : > { %p3260_p10 = pnand %p2765_p9, %p3232_p1  ;;  %p2995_p11 = scmp.ne.s32.totalorder %s3697_s1, %s2994_s5 }
  0x16   : > { %p3001_p3 = scmp.lt.u32.totalorder %s2994_s5, %s3697_s1 }
  0x17   : > { %p2996_p12 = pneg %p3260_p10 }
  0x19   : > { %p2997_p13 = pnand %p2996_p12, %p2995_p11 }
  0x1b   : > { %p2998_p0 = pneg %p2997_p13 }
  0x1d   : > { %p3003_p5 = pnand %p3001_p3, %p2998_p0 }
  0x1f   : > { %3006 = shalt.err (!%p3003_p5)
}
  0x20   : > { %s3007_s10 = scalar_lea.vmem %s171_s26, 5120  ;;  %p3015_p1 = scmp.lt.s32.totalorder %s171_s26, %s171_s26 }
  0x21   : > { %p3008_p7 = scmp.ne.s32.totalorder %s171_s26, %s3007_s10  ;;  %p3016_p4 = scmp.lt.s32.totalorder %s3007_s10, %s3007_s10 }
  0x23   : > { %p3010_p9 = pnand %p3008_p7, %p2996_p12  ;;  %p3017_p8 = por %p3016_p4, %p3015_p1 }
  0x25   : > { %p3011_p6 = pneg %p3010_p9 }
  0x27   : > { %p3018_p2 = pnand %p3017_p8, %p3011_p6 }
  0x29   : > { %3021 = shalt.err (!%p3018_p2)
}
  0x2a   : > { %s3170_s11 = smov 64   ;;  %s3171_s18 = smov 4  }
  0x2b   : > { %2768 = dma.hbm_to_vmem [thread:$0]  (!%p3260_p10), %s3697_s1, 5120, %s171_s26, [#allocation7], %s3170_s11, %s3170_s11, %s3171_s18  }
  0x2c   : > { %s3022_s4 = scalar_lea.hbm %s3698_s2, 16 }
  0x2d   : > { %p3023_p11 = scmp.ne.s32.totalorder %s3698_s2, %s3022_s4  ;;  %p3029_p4 = scmp.lt.u32.totalorder %s3022_s4, %s3698_s2 }
  0x2f   : > { %p3025_p1 = pnand %p3023_p11, %p2996_p12 }
  0x31   : > { %p3026_p2 = pneg %p3025_p1 }
  0x33   : > { %p3031_p6 = pnand %p3029_p4, %p3026_p2 }
  0x35   : > { %3034 = shalt.err (!%p3031_p6)
}
  0x36   : > { %s3035_s26 = scalar_lea.vmem %s3264_s29, 16  ;;  %s3042_s9 = scalar_lea.vmem %s3264_s29, 32 }
  0x37   : > { %p3036_p8 = scmp.ne.s32.totalorder %s3264_s29, %s3035_s26  ;;  %p3043_p3 = scmp.lt.s32.totalorder %s3264_s29, %s3264_s29 }
  0x38   : > { %p3044_p5 = scmp.lt.s32.totalorder %s3042_s9, %s3035_s26 }
  0x39   : > { %p3038_p13 = pnand %p3036_p8, %p2996_p12 }
  0x3a   : > { %p3045_p7 = por %p3044_p5, %p3043_p3 }
  0x3b   : > { %p3039_p0 = pneg %p3038_p13 }
  0x3d   : > { %p3046_p9 = pnand %p3045_p7, %p3039_p0 }
  0x3f   : > { %3049 = shalt.err (!%p3046_p9)
}
  0x40   : > { %2771 = dma.hbm_to_vmem [thread:$0]  (!%p3260_p10), %s3698_s2, 16, %s3264_s29, [#allocation7]  }
  0x41   : > { %s39_s18 = sadd.s32 1, %s3162_s16  ;;  %s48_s19 = sadd.s32 1, %s3154_s14 }
  0x42   : > { %p41_p12 = scmp.ge.s32.totalorder %s39_s18, 4  ;;  %p55_p11 = scmp.ne.s32.totalorder %s3154_s14, %s3150_s13 }
  0x43   : > { %p56_p1 = scmp.eq.s32.totalorder %s3166_s17, 0  ;;  %p2782_p2 = scmp.lt.s32.totalorder %s3166_s17, 4 }
  0x44   : > { %s3723_s18 = smov (%p41_p12, %s39_s18), 0  ;;  %p3710_p6 = scmp.ne.s32.totalorder %s3705_s21, 0 }
  0x45   : > { %p57_p4 = por %p56_p1, %p55_p11  ;;  %s43_s25 = ssub.s32 %s3162_s16, %s3723_s18 }
  0x46   : > { %p3324_p8 = por %p3710_p6, %p55_p11  ;;  %s197_s28 = sand.u32 1, %s3154_s14  }
  0x47   : > { %p46_p13 = scmp.eq.s32.totalorder %s43_s25, 0  ;;  %s2750_s29 = smul.u32 640, %s197_s28 }
  0x48   : > { %p3331_p10 = pnand %p2782_p2, %p57_p4  ;;  %s2751_s5 = smul.u32 10240, %s3162_s16 }
  0x49   : > { %s3336_s4 = scalar_select %p46_p13, %s3154_s14, %s48_s19  }
  0x4a   : > { %s201_s6 = scalar_lea.vmem [#allocation3], %s2750_s29  ;;  %s3342_s26 = scalar_lea.hbm %s3696_s0, %s2751_s5 }
  0x4b   : > { %s211_s7 = sshll.u32 %s201_s6, 4  ;;  %s3346_s9 = scalar_lea.sflag [#allocation4], %s197_s28  ;;  %s3344_s7 = int_to_ptr.vmem [resolvable:$true] %s211_s7 }
  0x4c   : > { %s3050_s10 = scalar_lea.hbm %s3342_s26, 10240  ;;  %p3052_p3 = pneg %p3331_p10 }
  0x4d   : > { %p3051_p0 = scmp.ne.s32.totalorder %s3342_s26, %s3050_s10  ;;  %s3055_s25 = scalar_lea.hbm %s3696_s0, 40960 }
  0x4e   : > { %p3056_p9 = scmp.lt.u32.totalorder %s3342_s26, %s3696_s0  ;;  %p3057_p12 = scmp.lt.u32.totalorder %s3055_s25, %s3050_s10 }
  0x4f   : > { %p3053_p5 = pnand %p3052_p3, %p3051_p0  ;;  %p3059_p1 = scmp.lt.u32.totalorder %s3050_s10, %s3342_s26 }
  0x50   : > { %p3058_p11 = por %p3057_p12, %p3056_p9 }
  0x51   : > { %p3054_p7 = pneg %p3053_p5 }
  0x52   : > { %p3060_p2 = por %p3059_p1, %p3058_p11 }
  0x54   : > { %p3061_p4 = pnand %p3060_p2, %p3054_p7 }
  0x56   : > { %3064 = shalt.err (!%p3061_p4)
}
  0x57   : > { %s3065_s28 = scalar_lea.vmem %s3344_s7, 10240  ;;  %s3172_s6 = smov [#allocation3]  }
  0x58   : > { %p3066_p6 = scmp.ne.s32.totalorder %s3344_s7, %s3065_s28  ;;  %s3070_s21 = sshll.u32 %s3172_s6, 4  ;;  %s3071_s21 = int_to_ptr.vmem [resolvable:$false] %s3070_s21 }
  0x59   : > { %s3072_s8 = scalar_lea.vmem %s3071_s21, 20480  ;;  %p3073_p5 = scmp.lt.s32.totalorder %s3344_s7, %s3071_s21 }
  0x5a   : > { %p3068_p13 = pnand %p3066_p6, %p3052_p3  ;;  %p3074_p9 = scmp.lt.s32.totalorder %s3072_s8, %s3065_s28 }
  0x5c   : > { %p3069_p0 = pneg %p3068_p13  ;;  %p3075_p12 = por %p3074_p9, %p3073_p5 }
  0x5e   : > { %p3076_p11 = pnand %p3075_p12, %p3069_p0 }
  0x60   : > { %3079 = shalt.err (!%p3076_p11)
}
  0x61   : > { %s3173_s10 = smov 320   ;;  %s3174_s11 = smov 20  }
  0x62   : > { %2775 = dma.hbm_to_vmem [thread:$0]  (!%p3331_p10), %s3342_s26, 10240, %s3344_s7, %s3346_s9, %s3173_s10, %s3173_s10, %s3174_s11  }
  0x63   : > { %p3713_p3 = scmp.ne.s32.totalorder %s3708_s24, 0 }
  0x64   : > { %s3377_s19 = sand.u32 (!%p3713_p3), 1, %s3150_s13   ;;  %p3714_p7 = scmp.ne.s32.totalorder (!%p3713_p3), %s3706_s22, 0 }
  0x65   : > { %223 = sbr.rel (%p3713_p3) target bundleno = 540 (0x21c), region = 32  ;;  %s226_s29 = scalar_lea.sflag (!%p3713_p3), [#allocation4], %s3377_s19 }
  0x66   : > { %s2752_s25 = smul.u32 (!%p3713_p3), 640, %s3377_s19 }
  0x68   : > { %s3381_s5 = scalar_lea.vmem (!%p3713_p3), [#allocation3], %s2752_s25 }
  0x6c   : > { %3133 = dma.done.wait (%p3714_p7), %s226_s29, 10240  }
  0x6d   : > { %3135 = vsyncadd (%p3714_p7), %s226_s29, 4294957056  ;;  %p3715_p10 = scmp.ne.s32.totalorder %s3704_s20, 0 }
  0x6f   : > { %3137 = dma.done.wait (%p3715_p10), [#allocation7], 5136  }
  0x70   : > { %3139 = vsyncadd (%p3715_p10), [#allocation7], 4294962160  ;;  %v2842_v0 = vld [vmem:[#allocation6 + $0x40] sm:$0xff]   ;;  %v2844_v2 = vld [vmem:[#allocation6 + $0x48] sm:$0xff]   ;;  %s2151_s20 = sshll.u32 %s3377_s19, 7  ;;  %s2342_s24 = sshll.u32 %s3158_s15, 11 }
  0x71   : > { %v2843_v1 = vld [vmem:[#allocation6] sm:$0xff]   ;;  %2438 = vmatprep.subr.bf16.mxu0 %v2842_v0  ;;  %2734 = vmatprep.subr.bf16.mxu1 %v2842_v0  ;;  %v2845_v3 = vld [vmem:[#allocation6 + $0x8] sm:$0xff]   ;;  %v2846_v4 = vld [vmem:[#allocation6 + $0x50] sm:$0xff]   ;;  %s3556_s22 = scalar_lea.vmem [#allocation9], %s2151_s20  ;;  %s3645_s9 = scalar_lea.hbm %s3699_s3, %s2342_s24 }
  0x72   : > { %2439 = vmatpush3.bf16.msra.mxu0 %v2843_v1  ;;  %2742 = vmatpush3.bf16.msra.mxu1 %v2843_v1  ;;  %v2847_v5 = vld [vmem:[#allocation6 + $0x10] sm:$0xff]   ;;  %v2848_v6 = vld [vmem:[#allocation6 + $0x58] sm:$0xff]   ;;  %v2850_v8 = vld [vmem:[#allocation6 + $0x60] sm:$0xff]   ;;  %s2025_s30 = sshll.u32 %s3556_s22, 4  ;;  %s2011_s15 = scalar_lea.sflag [#allocation5], %s3377_s19  ;;  %s3647_s30 = int_to_ptr.vmem [resolvable:$true] %s2025_s30 }
  0x73   : > { %2440 = vmatprep.subr.bf16.mxu0 %v2844_v2  ;;  %2735 = vmatprep.subr.bf16.mxu1 %v2844_v2  ;;  %v2849_v7 = vld [vmem:[#allocation6 + $0x18] sm:$0xff]   ;;  %v2851_v9 = vld [vmem:[#allocation6 + $0x20] sm:$0xff]   ;;  %v2852_v10 = vld [vmem:[#allocation6 + $0x68] sm:$0xff]   ;;  %s3080_s28 = scalar_lea.vmem %s3647_s30, 2048  ;;  %s3175_s6 = smov [#allocation9]  }
  0x74   : > { %v2860_v11 = vld [vmem:[%s3381_s5 + $0x4] ss:$20 sps:$4 sm:$0xff]   ;;  %v2853_v13 = vld [vmem:[#allocation6 + $0x28] sm:$0xff]   ;;  %v2854_v14 = vld [vmem:[#allocation6 + $0x70] sm:$0xff]   ;;  %p3081_p1 = scmp.ne.s32.totalorder %s3647_s30, %s3080_s28  ;;  %s3084_s21 = sshll.u32 %s3175_s6, 4  ;;  %s3085_s21 = int_to_ptr.vmem [resolvable:$false] %s3084_s21 }
  0x75   : > { %v2863_v12 = vld [vmem:[%s3381_s5 + $0x1e4] ss:$20 sps:$4 sm:$0xff]   ;;  %1204 = vmatprep.mubr.bf16.mxu0 %v2860_v11  ;;  %v2855_v15 = vld [vmem:[#allocation6 + $0x30] sm:$0xff]   ;;  %v2866_v23 = vld [vmem:[#allocation6 + $0xc8] sm:$0xff]   ;;  %s3086_s8 = scalar_lea.vmem %s3085_s21, 4096  ;;  %p3087_p6 = scmp.lt.s32.totalorder %s3647_s30, %s3085_s21 }
  0x76   : > { %2441 = vmatpush3.bf16.msra.mxu0 %v2845_v3  ;;  %2743 = vmatpush3.bf16.msra.mxu1 %v2845_v3  ;;  %v2856_v16 = vld [vmem:[#allocation6 + $0x78] sm:$0xff]   ;;  %v2864_v18 = vld [vmem:[#allocation6 + $0xc0] sm:$0xff]   ;;  %v2886_v26 = vld [vmem:[#allocation6 + $0x108] sm:$0xff]   ;;  %p3082_p2 = pnand %p3081_p1, %p3324_p8  ;;  %p3088_p13 = scmp.lt.s32.totalorder %s3086_s8, %s3080_s28 }
  0x77   : > { %2442 = vmatprep.subr.bf16.mxu0 %v2846_v4  ;;  %2736 = vmatprep.subr.bf16.mxu1 %v2846_v4  ;;  %v2857_v17 = vld [vmem:[#allocation6 + $0x38] sm:$0xff]   ;;  %v2867_v19 = vld [vmem:[#allocation6 + $0x100] sm:$0xff]   ;;  %v2868_v27 = vld [vmem:[#allocation6 + $0x88] sm:$0xff]  }
  0x78   : > { %1300 = vmatprep.mubr.bf16.mxu1 %v2863_v12  ;;  %v2858_v20 = vld [vmem:[%s3381_s5] ss:$20 sps:$4 sm:$0xff]   ;;  %v2873_v28 = vld [vmem:[%s3381_s5 + $0x28] ss:$20 sps:$4 sm:$0xff]   ;;  %v2883_v37 = vld [vmem:[%s3381_s5 + $0x50] ss:$20 sps:$4 sm:$0xff]   ;;  %p3083_p4 = pneg %p3082_p2  ;;  %p3089_p0 = por %p3088_p13, %p3087_p6 }
  0x79   : > { %v2861_v21 = vld [vmem:[%s3381_s5 + $0x1e0] ss:$20 sps:$4 sm:$0xff]   ;;  %v2874_v30 = vld [vmem:[%s3381_s5 + $0x208] ss:$20 sps:$4 sm:$0xff]   ;;  %v2884_v39 = vld [vmem:[%s3381_s5 + $0x230] ss:$20 sps:$4 sm:$0xff]  }
  0x7a   : > { %2443 = vmatpush3.bf16.msra.mxu0 %v2847_v5  ;;  %2744 = vmatpush3.bf16.msra.mxu1 %v2847_v5  ;;  %v2865_v22 = vld [vmem:[#allocation6 + $0x80] sm:$0xff]   ;;  %v2875_v29 = vld [vmem:[#allocation6 + $0xd0] sm:$0xff]   ;;  %v2877_v33 = vld [vmem:[#allocation6 + $0xd8] sm:$0xff]   ;;  %p3090_p5 = pnand %p3089_p0, %p3083_p4 }
  0x7b   : > { %2444 = vmatprep.subr.bf16.mxu0 %v2848_v6  ;;  %2737 = vmatprep.subr.bf16.mxu1 %v2848_v6  ;;  %v2869_v24 = vld [vmem:[%s3381_s5 + $0x2c] ss:$20 sps:$4 sm:$0xff]   ;;  %v2876_v31 = vld [vmem:[#allocation6 + $0x90] sm:$0xff]   ;;  %v2878_v35 = vld [vmem:[#allocation6 + $0x98] sm:$0xff]  }
  0x7c   : > { %v2871_v25 = vld [vmem:[%s3381_s5 + $0x20c] ss:$20 sps:$4 sm:$0xff]   ;;  %v2879_v32 = vld [vmem:[%s3381_s5 + $0x54] ss:$20 sps:$4 sm:$0xff]   ;;  %v2890_v42 = vld [vmem:[%s3381_s5 + $0x7c] ss:$20 sps:$4 sm:$0xff]  }
  0x7d   : > { %v2881_v34 = vld [vmem:[%s3381_s5 + $0x234] ss:$20 sps:$4 sm:$0xff]   ;;  %v2885_v36 = vld [vmem:[#allocation6 + $0xe0] sm:$0xff]   ;;  %v2892_v43 = vld [vmem:[%s3381_s5 + $0x25c] ss:$20 sps:$4 sm:$0xff]  }
  0x7e   : > { %2445 = vmatpush3.bf16.msra.mxu0 %v2849_v7  ;;  %2745 = vmatpush3.bf16.msra.mxu1 %v2849_v7  ;;  %v2899_v38 = vld [vmem:[#allocation6 + $0x110] sm:$0xff]   ;;  %v2887_v40 = vld [vmem:[#allocation6 + $0xa0] sm:$0xff]   ;;  %v2888_v41 = vld [vmem:[#allocation6 + $0xe8] sm:$0xff]  }
  0x7f   : > { %2446 = vmatprep.subr.bf16.mxu0 %v2850_v8  ;;  %2738 = vmatprep.subr.bf16.mxu1 %v2850_v8  ;;  %v2889_v44 = vld [vmem:[#allocation6 + $0xa8] sm:$0xff]   ;;  %v2913_v45 = vld [vmem:[#allocation6 + $0x118] sm:$0xff]   ;;  %v2896_v48 = vld [vmem:[#allocation6 + $0xf0] sm:$0xff]  }
  0x80   : > { %v2894_v46 = vld [vmem:[%s3381_s5 + $0x78] ss:$20 sps:$4 sm:$0xff]   ;;  %v2897_v49 = vld [vmem:[#allocation6 + $0xb0] sm:$0xff]   ;;  %v2920_v52 = vld [vmem:[#allocation6 + $0x120] sm:$0xff]  }
  0x81   : > { %v2895_v47 = vld [vmem:[%s3381_s5 + $0x258] ss:$20 sps:$4 sm:$0xff]   ;;  %v2903_v55 = vld [vmem:[%s3381_s5 + $0x8] ss:$20 sps:$4 sm:$0xff]   ;;  %v2906_v56 = vld [vmem:[%s3381_s5 + $0xa0] ss:$20 sps:$4 sm:$0xff]  }
  0x82   : > { %2447 = vmatpush3.bf16.msra.mxu0 %v2851_v9  ;;  %2746 = vmatpush3.bf16.msra.mxu1 %v2851_v9  ;;  %v2898_v50 = vld [vmem:[#allocation6 + $0xf8] sm:$0xff]   ;;  %v2905_v53 = vld [vmem:[%s3381_s5 + $0xc] ss:$20 sps:$4 sm:$0xff]   ;;  %v2909_v59 = vld [vmem:[%s3381_s5 + $0x34] ss:$20 sps:$4 sm:$0xff]  }
  0x83   : > { %2448 = vmatprep.subr.bf16.mxu0 %v2852_v10  ;;  %2739 = vmatprep.subr.bf16.mxu1 %v2852_v10  ;;  %v2901_v51 = vld [vmem:[%s3381_s5 + $0xa4] ss:$20 sps:$4 sm:$0xff]   ;;  %v2933_v57 = vld [vmem:[#allocation6 + $0x128] sm:$0xff]   ;;  %v2940_v60 = vld [vmem:[#allocation6 + $0x130] sm:$0xff]  }
  0x84   : > { %v2900_v54 = vld [vmem:[#allocation6 + $0xb8] sm:$0xff]   ;;  %v2907_v58 = vld [vmem:[%s3381_s5 + $0xcc] ss:$20 sps:$4 sm:$0xff]   ;;  %v2912_v62 = vld [vmem:[%s3381_s5 + $0x30] ss:$20 sps:$4 sm:$0xff]  }
  0x85   : > { %v2911_v61 = vld [vmem:[%s3381_s5 + $0xc8] ss:$20 sps:$4 sm:$0xff]   ;;  %v2918_v2 = vld [vmem:[%s3381_s5 + $0xf0] ss:$20 sps:$4 sm:$0xff]   ;;  %v2919_v3 = vld [vmem:[%s3381_s5 + $0x58] ss:$20 sps:$4 sm:$0xff]  }
  0x86   : > { %2449 = vmatpush3.bf16.msra.mxu0 %v2853_v13  ;;  %2747 = vmatpush3.bf16.msra.mxu1 %v2853_v13  ;;  %v2914_v63 = vld [vmem:[%s3381_s5 + $0xf4] ss:$20 sps:$4 sm:$0xff]   ;;  %v2916_v0 = vld [vmem:[%s3381_s5 + $0x5c] ss:$20 sps:$4 sm:$0xff]   ;;  %v2923_v5 = vld [vmem:[%s3381_s5 + $0x84] ss:$20 sps:$4 sm:$0xff]  }
  0x87   : > { %2450 = vmatprep.subr.bf16.mxu0 %v2854_v14  ;;  %2740 = vmatprep.subr.bf16.mxu1 %v2854_v14  ;;  %v2953_v1 = vld [vmem:[#allocation6 + $0x138] sm:$0xff]   ;;  %v2926_v7 = vld [vmem:[%s3381_s5 + $0x80] ss:$20 sps:$4 sm:$0xff]  }
  0x88   : > { %v2921_v4 = vld [vmem:[%s3381_s5 + $0x11c] ss:$20 sps:$4 sm:$0xff]   ;;  %v2925_v6 = vld [vmem:[%s3381_s5 + $0x118] ss:$20 sps:$4 sm:$0xff]   ;;  %v2931_v10 = vld [vmem:[%s3381_s5 + $0x140] ss:$20 sps:$4 sm:$0xff]  }
  0x89   : > { %v2927_v8 = vld [vmem:[%s3381_s5 + $0x144] ss:$20 sps:$4 sm:$0xff]   ;;  %v2929_v9 = vld [vmem:[%s3381_s5 + $0xac] ss:$20 sps:$4 sm:$0xff]   ;;  %v2932_v11 = vld [vmem:[%s3381_s5 + $0xa8] ss:$20 sps:$4 sm:$0xff]  }
  0x8a   : > { %2451 = vmatpush3.bf16.msra.mxu0 %v2855_v15  ;;  %2748 = vmatpush3.bf16.msra.mxu1 %v2855_v15  ;;  %v2934_v12 = vld [vmem:[%s3381_s5 + $0x16c] ss:$20 sps:$4 sm:$0xff]   ;;  %v2936_v13 = vld [vmem:[%s3381_s5 + $0xd4] ss:$20 sps:$4 sm:$0xff]   ;;  %v2939_v15 = vld [vmem:[%s3381_s5 + $0xd0] ss:$20 sps:$4 sm:$0xff]  }
  0x8b   : > { %2452 = vmatprep.subr.bf16.mxu0 %v2856_v16  ;;  %2741 = vmatprep.subr.bf16.mxu1 %v2856_v16  ;;  %v2938_v14 = vld [vmem:[%s3381_s5 + $0x168] ss:$20 sps:$4 sm:$0xff]  }
  0x8c   : > { %v2941_v16 = vld [vmem:[%s3381_s5 + $0x194] ss:$20 sps:$4 sm:$0xff]  }
  0x8e   : > { %2453 = vmatpush3.bf16.msra.mxu0 %v2857_v17  ;;  %2749 = vmatpush3.bf16.msra.mxu1 %v2857_v17  ;;  %v2943_v17 = vld [vmem:[%s3381_s5 + $0xfc] ss:$20 sps:$4 sm:$0xff]  }
  0x8f   : > { %2550 = vmatprep.subr.bf16.mxu1 %v2864_v18  ;;  %2686 = vmatprep.subr.bf16.mxu0 %v2867_v19  ;;  %v2945_v18 = vld [vmem:[%s3381_s5 + $0x190] ss:$20 sps:$4 sm:$0xff]  }
  0x91   : > { %1205 = vmatmul.mubr.bf16.vlgmr.msra.gmra.mrb[0].mxu0 %v2858_v20  ;;  %1301 = vmatmul.mubr.bf16.vlgmr.msra.gmra.mrb[0].mxu1 %v2861_v21  ;;  %v2947_v20 = vld [vmem:[%s3381_s5 + $0x1bc] ss:$20 sps:$4 sm:$0xff]   ;;  %v2949_v21 = vld [vmem:[%s3381_s5 + $0x124] ss:$20 sps:$4 sm:$0xff]  }
  0x92   : > { %2551 = vmatpush3.bf16.msra.mxu1 %v2865_v22  ;;  %2687 = vmatpush3.bf16.msra.mxu0 %v2867_v19  ;;  %v2946_v19 = vld [vmem:[%s3381_s5 + $0xf8] ss:$20 sps:$4 sm:$0xff]  }
  0x93   : > { %2552 = vmatprep.subr.bf16.mxu1 %v2866_v23  ;;  %1212 = vmatprep.mubr.bf16.mxu0 %v2869_v24  ;;  %v2951_v22 = vld [vmem:[%s3381_s5 + $0x1b8] ss:$20 sps:$4 sm:$0xff]   ;;  %v2952_v23 = vld [vmem:[%s3381_s5 + $0x120] ss:$20 sps:$4 sm:$0xff]  }
  0x94   : > { %1308 = vmatprep.mubr.bf16.mxu1 %v2871_v25  ;;  %2688 = vmatprep.subr.bf16.mxu0 %v2886_v26  ;;  %v2954_v24 = vld [vmem:[%s3381_s5 + $0x14c] ss:$20 sps:$4 sm:$0xff]   ;;  %v2956_v25 = vld [vmem:[%s3381_s5 + $0x10] ss:$20 sps:$4 sm:$0xff]  }
  0x96   : > { %2553 = vmatpush3.bf16.msra.mxu1 %v2868_v27  ;;  %2689 = vmatpush3.bf16.msra.mxu0 %v2886_v26  ;;  %v2957_v26 = vld [vmem:[%s3381_s5 + $0x148] ss:$20 sps:$4 sm:$0xff]   ;;  %v2958_v27 = vld [vmem:[%s3381_s5 + $0x38] ss:$20 sps:$4 sm:$0xff]  }
  0x97   : > { %2554 = vmatprep.subr.bf16.mxu1 %v2875_v29  ;;  %2690 = vmatprep.subr.bf16.mxu0 %v2899_v38  ;;  %v2961_v29 = vld [vmem:[%s3381_s5 + $0x60] ss:$20 sps:$4 sm:$0xff]  }
  0x99   : > { %1213 = vmatmul.mubr.bf16.gmra.mrb[4].mxu0 %v2873_v28  ;;  %1309 = vmatmul.mubr.bf16.gmra.mrb[4].mxu1 %v2874_v30  ;;  %v2959_v28 = vld [vmem:[%s3381_s5 + $0x174] ss:$20 sps:$4 sm:$0xff]   ;;  %v2962_v30 = vld [vmem:[%s3381_s5 + $0x170] ss:$20 sps:$4 sm:$0xff]  }
  0x9a   : > { %2555 = vmatpush3.bf16.msra.mxu1 %v2876_v31  ;;  %1220 = vmatprep.mubr.bf16.mxu0 %v2879_v32  ;;  %v2963_v31 = vld [vmem:[%s3381_s5 + $0x88] ss:$20 sps:$4 sm:$0xff]  }
  0x9b   : > { %2556 = vmatprep.subr.bf16.mxu1 %v2877_v33  ;;  %1316 = vmatprep.mubr.bf16.mxu1 %v2881_v34  ;;  %v2964_v32 = vld [vmem:[%s3381_s5 + $0x19c] ss:$20 sps:$4 sm:$0xff]   ;;  %v2967_v34 = vld [vmem:[%s3381_s5 + $0x198] ss:$20 sps:$4 sm:$0xff]  }
  0x9c   : > { %2691 = vmatpush3.bf16.msra.mxu0 %v2899_v38  ;;  %v2966_v33 = vld [vmem:[%s3381_s5 + $0xb0] ss:$20 sps:$4 sm:$0xff]   ;;  %v2972_v38 = vld [vmem:[%s3381_s5 + $0x1c0] ss:$20 sps:$4 sm:$0xff]  }
  0x9d   : > { %2692 = vmatprep.subr.bf16.mxu0 %v2913_v45 }
  0x9e   : > { %2557 = vmatpush3.bf16.msra.mxu1 %v2878_v35  ;;  %v2968_v35 = vld [vmem:[%s3381_s5 + $0xd8] ss:$20 sps:$4 sm:$0xff]  }
  0x9f   : > { %2558 = vmatprep.subr.bf16.mxu1 %v2885_v36  ;;  %v2969_v36 = vld [vmem:[%s3381_s5 + $0x1c4] ss:$20 sps:$4 sm:$0xff]  }
  0xa0   : > { %2693 = vmatpush3.bf16.msra.mxu0 %v2913_v45  ;;  %v2981_v45 = vld [vmem:[%s3381_s5 + $0x1a0] ss:$20 sps:$4 sm:$0xff]  }
  0xa1   : > { %1221 = vmatmul.mubr.bf16.gmra.mrb[8].mxu0 %v2883_v37  ;;  %1317 = vmatmul.mubr.bf16.gmra.mrb[8].mxu1 %v2884_v39  ;;  %v2971_v37 = vld [vmem:[%s3381_s5 + $0x100] ss:$20 sps:$4 sm:$0xff]   ;;  %v2973_v39 = vld [vmem:[%s3381_s5 + $0x128] ss:$20 sps:$4 sm:$0xff]  }
  0xa2   : > { %2559 = vmatpush3.bf16.msra.mxu1 %v2887_v40  ;;  %1228 = vmatprep.mubr.bf16.mxu0 %v2890_v42  ;;  %v2974_v40 = vld [vmem:[%s3381_s5 + $0x1ec] ss:$20 sps:$4 sm:$0xff]   ;;  %v2977_v42 = vld [vmem:[%s3381_s5 + $0x1e8] ss:$20 sps:$4 sm:$0xff]  }
  0xa3   : > { %2560 = vmatprep.subr.bf16.mxu1 %v2888_v41  ;;  %1324 = vmatprep.mubr.bf16.mxu1 %v2892_v43  ;;  %v2976_v41 = vld [vmem:[%s3381_s5 + $0x150] ss:$20 sps:$4 sm:$0xff]   ;;  %v2978_v43 = vld [vmem:[%s3381_s5 + $0x178] ss:$20 sps:$4 sm:$0xff]  }
  0xa4   : > { %2694 = vmatprep.subr.bf16.mxu0 %v2920_v52 }
  0xa5   : > { %2695 = vmatpush3.bf16.msra.mxu0 %v2920_v52  ;;  %v2989_v52 = vld [vmem:[%s3381_s5 + $0x264] ss:$20 sps:$4 sm:$0xff]  }
  0xa6   : > { %2561 = vmatpush3.bf16.msra.mxu1 %v2889_v44  ;;  %2696 = vmatprep.subr.bf16.mxu0 %v2933_v57  ;;  %v2979_v44 = vld [vmem:[%s3381_s5 + $0x214] ss:$20 sps:$4 sm:$0xff]  }
  0xa7   : > { %2562 = vmatprep.subr.bf16.mxu1 %v2896_v48  ;;  %v2984_v48 = vld [vmem:[%s3381_s5 + $0x23c] ss:$20 sps:$4 sm:$0xff]  }
  0xa9   : > { %1229 = vmatmul.mubr.bf16.gmra.mrb[12].mxu0 %v2894_v46  ;;  %1325 = vmatmul.mubr.bf16.gmra.mrb[12].mxu1 %v2895_v47  ;;  %v2982_v46 = vld [vmem:[%s3381_s5 + $0x210] ss:$20 sps:$4 sm:$0xff]   ;;  %v2983_v47 = vld [vmem:[%s3381_s5 + $0x1c8] ss:$20 sps:$4 sm:$0xff]  }
  0xaa   : > { %2563 = vmatpush3.bf16.msra.mxu1 %v2897_v49  ;;  %1236 = vmatprep.mubr.bf16.mxu0 %v2901_v51  ;;  %v2986_v49 = vld [vmem:[%s3381_s5 + $0x1f0] ss:$20 sps:$4 sm:$0xff]   ;;  %v2988_v51 = vld [vmem:[%s3381_s5 + $0x218] ss:$20 sps:$4 sm:$0xff]  }
  0xab   : > { %2564 = vmatprep.subr.bf16.mxu1 %v2898_v50  ;;  %1365 = vmatprep.mubr.bf16.mxu1 %v2905_v53  ;;  %v2987_v50 = vld [vmem:[%s3381_s5 + $0x238] ss:$20 sps:$4 sm:$0xff]   ;;  %v2991_v53 = vld [vmem:[%s3381_s5 + $0x240] ss:$20 sps:$4 sm:$0xff]  }
  0xac   : > { %2697 = vmatpush3.bf16.msra.mxu0 %v2933_v57 }
  0xad   : > { %2698 = vmatprep.subr.bf16.mxu0 %v2940_v60 }
  0xae   : > { %2565 = vmatpush3.bf16.msra.mxu1 %v2900_v54  ;;  %v2992_v54 = vld [vmem:[%s3381_s5 + $0x260] ss:$20 sps:$4 sm:$0xff]  }
  0xb0   : > { %2699 = vmatpush3.bf16.msra.mxu0 %v2940_v60 }
  0xb1   : > { %1237 = vmatmul.mubr.bf16.gmra.mrb[16].mxu0 %v2906_v56  ;;  %1366 = vmatmul.mubr.bf16.vlgmr.msra.gmra.mrb[16].mxu1 %v2903_v55  ;;  %v2993_v55 = vld [vmem:[%s3381_s5 + $0x268] ss:$20 sps:$4 sm:$0xff]  }
  0xb2   : > { %1244 = vmatprep.mubr.bf16.mxu0 %v2907_v58  ;;  %1373 = vmatprep.mubr.bf16.mxu1 %v2909_v59 }
  0xb3   : > { %2700 = vmatprep.subr.bf16.mxu0 %v2953_v1 }
  0xb4   : > { %2701 = vmatpush3.bf16.msra.mxu0 %v2953_v1 }
  0xb9   : > { %1245 = vmatmul.mubr.bf16.gmra.mrb[20].mxu0 %v2911_v61  ;;  %1374 = vmatmul.mubr.bf16.gmra.mrb[20].mxu1 %v2912_v62 }
  0xba   : > { %1252 = vmatprep.mubr.bf16.mxu0 %v2914_v63  ;;  %1381 = vmatprep.mubr.bf16.mxu1 %v2916_v0 }
  0xc1   : > { %1253 = vmatmul.mubr.bf16.gmra.mrb[24].mxu0 %v2918_v2  ;;  %1382 = vmatmul.mubr.bf16.gmra.mrb[24].mxu1 %v2919_v3 }
  0xc2   : > { %1260 = vmatprep.mubr.bf16.mxu0 %v2921_v4  ;;  %1389 = vmatprep.mubr.bf16.mxu1 %v2923_v5 }
  0xc9   : > { %1261 = vmatmul.mubr.bf16.gmra.mrb[28].mxu0 %v2925_v6  ;;  %1390 = vmatmul.mubr.bf16.gmra.mrb[28].mxu1 %v2926_v7 }
  0xca   : > { %1268 = vmatprep.mubr.bf16.mxu0 %v2927_v8  ;;  %1397 = vmatprep.mubr.bf16.mxu1 %v2929_v9 }
  0xd1   : > { %1269 = vmatmul.mubr.bf16.gmra.mrb[32].mxu0 %v2931_v10  ;;  %1398 = vmatmul.mubr.bf16.gmra.mrb[32].mxu1 %v2932_v11 }
  0xd2   : > { %1276 = vmatprep.mubr.bf16.mxu0 %v2934_v12  ;;  %1405 = vmatprep.mubr.bf16.mxu1 %v2936_v13 }
  0xd9   : > { %1277 = vmatmul.mubr.bf16.gmra.mrb[36].mxu0 %v2938_v14  ;;  %1406 = vmatmul.mubr.bf16.gmra.mrb[36].mxu1 %v2939_v15 }
  0xda   : > { %1284 = vmatprep.mubr.bf16.mxu0 %v2941_v16  ;;  %1413 = vmatprep.mubr.bf16.mxu1 %v2943_v17 }
  0xe1   : > { %1285 = vmatmul.mubr.bf16.gmra.mrb[40].mxu0 %v2945_v18  ;;  %1414 = vmatmul.mubr.bf16.gmra.mrb[40].mxu1 %v2946_v19 }
  0xe2   : > { %1292 = vmatprep.mubr.bf16.mxu0 %v2947_v20  ;;  %1421 = vmatprep.mubr.bf16.mxu1 %v2949_v21 }
  0xe9   : > { %1293 = vmatmul.mubr.bf16.gmra.mrb[44].mxu0 %v2951_v22  ;;  %1422 = vmatmul.mubr.bf16.gmra.mrb[44].mxu1 %v2952_v23 }
  0xea   : > { %1429 = vmatprep.mubr.bf16.mxu1 %v2954_v24  ;;  %2702 = vmatprep.mubr.bf16.mxu0 %v2956_v25 }
  0xf1   : > { %1430 = vmatmul.mubr.bf16.gmra.mrb[48].mxu1 %v2957_v26  ;;  %2703 = vmatmul.mubr.bf16.vlgmr.msra.gmra.mrb[48].mxu0 %v2958_v27 }
  0xf2   : > { %1437 = vmatprep.mubr.bf16.mxu1 %v2959_v28  ;;  %2706 = vmatprep.mubr.bf16.mxu0 %v2961_v29 }
  0xf9   : > { %1438 = vmatmul.mubr.bf16.gmra.mrb[52].mxu1 %v2962_v30  ;;  %2707 = vmatmul.mubr.bf16.gmra.mrb[52].mxu0 %v2963_v31 }
  0xfa   : > { %1445 = vmatprep.mubr.bf16.mxu1 %v2964_v32  ;;  %2710 = vmatprep.mubr.bf16.mxu0 %v2966_v33 }
 0x101   : > { %1446 = vmatmul.mubr.bf16.gmra.mrb[56].mxu1 %v2967_v34  ;;  %2711 = vmatmul.mubr.bf16.gmra.mrb[56].mxu0 %v2968_v35 }
 0x102   : > { %1453 = vmatprep.mubr.bf16.mxu1 %v2969_v36  ;;  %2714 = vmatprep.mubr.bf16.mxu0 %v2971_v37 }
 0x109   : > { %1454 = vmatmul.mubr.bf16.gmra.mrb[60].mxu1 %v2972_v38  ;;  %2715 = vmatmul.mubr.bf16.gmra.mrb[60].mxu0 %v2973_v39 }
 0x10a   : > { %1461 = vmatprep.mubr.bf16.mxu1 %v2974_v40  ;;  %2718 = vmatprep.mubr.bf16.mxu0 %v2976_v41 }
 0x111   : > { %1462 = vmatmul.mubr.bf16.gmra.mrb[64].mxu1 %v2977_v42  ;;  %2719 = vmatmul.mubr.bf16.gmra.mrb[64].mxu0 %v2978_v43 }
 0x112   : > { %1469 = vmatprep.mubr.bf16.mxu1 %v2979_v44  ;;  %2722 = vmatprep.mubr.bf16.mxu0 %v2981_v45 }
 0x119   : > { %1470 = vmatmul.mubr.bf16.gmra.mrb[68].mxu1 %v2982_v46  ;;  %2723 = vmatmul.mubr.bf16.gmra.mrb[68].mxu0 %v2983_v47 }
 0x11a   : > { %1477 = vmatprep.mubr.bf16.mxu1 %v2984_v48  ;;  %2726 = vmatprep.mubr.bf16.mxu0 %v2986_v49 }
 0x121   : > { %1478 = vmatmul.mubr.bf16.gmra.mrb[72].mxu1 %v2987_v50  ;;  %2727 = vmatmul.mubr.bf16.gmra.mrb[72].mxu0 %v2988_v51 }
 0x122   : > { %1485 = vmatprep.mubr.bf16.mxu1 %v2989_v52  ;;  %2730 = vmatprep.mubr.bf16.mxu0 %v2991_v53 }
 0x129   : > { %1486 = vmatmul.mubr.bf16.gmra.mrb[76].mxu1 %v2992_v54  ;;  %2731 = vmatmul.mubr.bf16.gmra.mrb[76].mxu0 %v2993_v55 }
 0x164   : > { %v2526_v56 = vpop.f32.mrb[0].mxu1  ;;  %v2454_v57 = vpop.f32.mrb[0].mxu0 }
 0x165   : > { %v2527_v58 = vpop.f32.mrb[1].mxu1  ;;  %v2455_v59 = vpop.f32.mrb[1].mxu0 }
 0x166   : > { %v3471_v60 = vadd.f32 %v2527_v58, %v2526_v56  ;;  %v2529_v61 = vpop.f32.mrb[2].mxu1  ;;  %v2456_v62 = vadd.f32 %v2455_v59, %v2454_v57  ;;  %v2457_v63 = vpop.f32.mrb[2].mxu0 }
 0x167   : > { %v2530_v0 = vpop.f32.mrb[3].mxu1  ;;  %v2458_v1 = vpop.f32.mrb[3].mxu0 }
 0x168   : > { %v3473_v2 = vadd.f32 %v2530_v0, %v2529_v61  ;;  %v2459_v3 = vadd.f32 %v2458_v1, %v2457_v63 }
 0x16c   : > { %v2532_v4 = vpop.f32.mrb[4].mxu1  ;;  %v2460_v5 = vpop.f32.mrb[4].mxu0 }
 0x16d   : > { %v2533_v6 = vpop.f32.mrb[5].mxu1  ;;  %v2461_v7 = vpop.f32.mrb[5].mxu0 }
 0x16e   : > { %v3475_v8 = vadd.f32 %v2533_v6, %v2532_v4  ;;  %v2535_v9 = vpop.f32.mrb[6].mxu1  ;;  %v2462_v10 = vadd.f32 %v2461_v7, %v2460_v5  ;;  %v2463_v11 = vpop.f32.mrb[6].mxu0 }
 0x16f   : > { %v2536_v12 = vpop.f32.mrb[7].mxu1  ;;  %v2464_v13 = vpop.f32.mrb[7].mxu0 }
 0x170   : > { %v3477_v14 = vadd.f32 %v2536_v12, %v2535_v9  ;;  %v2465_v15 = vadd.f32 %v2464_v13, %v2463_v11 }
 0x174   : > { %v2538_v16 = vpop.f32.mrb[8].mxu1  ;;  %v2466_v17 = vpop.f32.mrb[8].mxu0 }
 0x175   : > { %v2539_v18 = vpop.f32.mrb[9].mxu1  ;;  %v2467_v19 = vpop.f32.mrb[9].mxu0 }
 0x176   : > { %v3479_v20 = vadd.f32 %v2539_v18, %v2538_v16  ;;  %v2541_v21 = vpop.f32.mrb[10].mxu1  ;;  %v2468_v22 = vadd.f32 %v2467_v19, %v2466_v17  ;;  %v2469_v23 = vpop.f32.mrb[10].mxu0 }
 0x177   : > { %v2542_v24 = vpop.f32.mrb[11].mxu1  ;;  %v2470_v25 = vpop.f32.mrb[11].mxu0 }
 0x178   : > { %v3481_v26 = vadd.f32 %v2542_v24, %v2541_v21  ;;  %v2471_v27 = vadd.f32 %v2470_v25, %v2469_v23 }
 0x17c   : > { %v2544_v28 = vpop.f32.mrb[12].mxu1  ;;  %v2472_v29 = vpop.f32.mrb[12].mxu0 }
 0x17d   : > { %v2545_v30 = vpop.f32.mrb[13].mxu1  ;;  %v2473_v31 = vpop.f32.mrb[13].mxu0 }
 0x17e   : > { %v3483_v32 = vadd.f32 %v2545_v30, %v2544_v28  ;;  %v2547_v33 = vpop.f32.mrb[14].mxu1  ;;  %v2474_v34 = vadd.f32 %v2473_v31, %v2472_v29  ;;  %v2475_v35 = vpop.f32.mrb[14].mxu0 }
 0x17f   : > { %v2548_v36 = vpop.f32.mrb[15].mxu1  ;;  %v2476_v37 = vpop.f32.mrb[15].mxu0 }
 0x180   : > { %v3485_v38 = vadd.f32 %v2548_v36, %v2547_v33  ;;  %v2477_v39 = vadd.f32 %v2476_v37, %v2475_v35 }
 0x184   : > { %v2566_v40 = vpop.f32.mrb[16].mxu1  ;;  %v2478_v41 = vpop.f32.mrb[16].mxu0 }
 0x185   : > { %v2567_v42 = vpop.f32.mrb[17].mxu1  ;;  %v2479_v43 = vpop.f32.mrb[17].mxu0 }
 0x186   : > { %v2568_v44 = vadd.f32 %v2567_v42, %v2566_v40  ;;  %v2569_v45 = vpop.f32.mrb[18].mxu1  ;;  %v2480_v46 = vadd.f32 %v2479_v43, %v2478_v41  ;;  %v2481_v47 = vpop.f32.mrb[18].mxu0 }
 0x187   : > { %v2570_v48 = vpop.f32.mrb[19].mxu1  ;;  %v2482_v49 = vpop.f32.mrb[19].mxu0 }
 0x188   : > { %v2571_v50 = vadd.f32 %v2570_v48, %v2569_v45  ;;  %v2483_v51 = vadd.f32 %v2482_v49, %v2481_v47  ;;  %v3487_v52 = vadd.f32 %v2568_v44, %v2456_v62 }
 0x18a   : > { %v3489_v53 = vadd.f32 %v2571_v50, %v2459_v3 }
 0x18c   : > { %v2572_v54 = vpop.f32.mrb[20].mxu1  ;;  %v2484_v55 = vpop.f32.mrb[20].mxu0 }
 0x18d   : > { %v2573_v56 = vpop.f32.mrb[21].mxu1  ;;  %v2485_v57 = vpop.f32.mrb[21].mxu0 }
 0x18e   : > { %v2574_v58 = vadd.f32 %v2573_v56, %v2572_v54  ;;  %v2575_v59 = vpop.f32.mrb[22].mxu1  ;;  %v2486_v61 = vadd.f32 %v2485_v57, %v2484_v55  ;;  %v2487_v63 = vpop.f32.mrb[22].mxu0 }
 0x18f   : > { %v2576_v0 = vpop.f32.mrb[23].mxu1  ;;  %v2488_v1 = vpop.f32.mrb[23].mxu0 }
 0x190   : > { %v2577_v4 = vadd.f32 %v2576_v0, %v2575_v59  ;;  %v2489_v5 = vadd.f32 %v2488_v1, %v2487_v63  ;;  %v3491_v6 = vadd.f32 %v2574_v58, %v2462_v10 }
 0x192   : > { %v3493_v7 = vadd.f32 %v2577_v4, %v2465_v15 }
 0x194   : > { %v2578_v62 = vpop.f32.mrb[24].mxu1  ;;  %v2490_v9 = vpop.f32.mrb[24].mxu0 }
 0x195   : > { %v2579_v3 = vpop.f32.mrb[25].mxu1  ;;  %v2491_v11 = vpop.f32.mrb[25].mxu0 }
 0x196   : > { %v2580_v12 = vadd.f32 %v2579_v3, %v2578_v62  ;;  %v2581_v13 = vpop.f32.mrb[26].mxu1  ;;  %v2492_v16 = vadd.f32 %v2491_v11, %v2490_v9  ;;  %v2493_v17 = vpop.f32.mrb[26].mxu0 }
 0x197   : > { %v2582_v18 = vpop.f32.mrb[27].mxu1  ;;  %v2494_v19 = vpop.f32.mrb[27].mxu0 }
 0x198   : > { %v2583_v21 = vadd.f32 %v2582_v18, %v2581_v13  ;;  %v2495_v23 = vadd.f32 %v2494_v19, %v2493_v17  ;;  %v3495_v24 = vadd.f32 %v2580_v12, %v2468_v22 }
 0x19a   : > { %v3497_v25 = vadd.f32 %v2583_v21, %v2471_v27 }
 0x19c   : > { %v2584_v10 = vpop.f32.mrb[28].mxu1  ;;  %v2496_v28 = vpop.f32.mrb[28].mxu0 }
 0x19d   : > { %v2585_v15 = vpop.f32.mrb[29].mxu1  ;;  %v2497_v29 = vpop.f32.mrb[29].mxu0 }
 0x19e   : > { %v2586_v30 = vadd.f32 %v2585_v15, %v2584_v10  ;;  %v2587_v31 = vpop.f32.mrb[30].mxu1  ;;  %v2498_v33 = vadd.f32 %v2497_v29, %v2496_v28  ;;  %v2499_v35 = vpop.f32.mrb[30].mxu0 }
 0x19f   : > { %v2588_v36 = vpop.f32.mrb[31].mxu1  ;;  %v2500_v37 = vpop.f32.mrb[31].mxu0 }
 0x1a0   : > { %v2589_v40 = vadd.f32 %v2588_v36, %v2587_v31  ;;  %v2501_v41 = vadd.f32 %v2500_v37, %v2499_v35  ;;  %v3499_v42 = vadd.f32 %v2586_v30, %v2474_v34 }
 0x1a2   : > { %v3501_v43 = vadd.f32 %v2589_v40, %v2477_v39 }
 0x1a4   : > { %v2590_v22 = vpop.f32.mrb[32].mxu1  ;;  %v2502_v44 = vpop.f32.mrb[32].mxu0 }
 0x1a5   : > { %v2591_v27 = vpop.f32.mrb[33].mxu1  ;;  %v2503_v45 = vpop.f32.mrb[33].mxu0 }
 0x1a6   : > { %v2592_v47 = vadd.f32 %v2591_v27, %v2590_v22  ;;  %v2593_v48 = vpop.f32.mrb[34].mxu1  ;;  %v3503_v49 = vadd.f32 %v2503_v45, %v2502_v44  ;;  %v2505_v50 = vpop.f32.mrb[34].mxu0 }
 0x1a7   : > { %v2594_v54 = vpop.f32.mrb[35].mxu1  ;;  %v2506_v55 = vpop.f32.mrb[35].mxu0 }
 0x1a8   : > { %v2595_v56 = vadd.f32 %v2594_v54, %v2593_v48  ;;  %v3505_v57 = vadd.f32 %v2506_v55, %v2505_v50  ;;  %v3507_v58 = vadd.f32 %v2592_v47, %v2480_v46 }
 0x1aa   : > { %v3509_v34 = vadd.f32 %v2595_v56, %v2483_v51 }
 0x1ac   : > { %v2596_v39 = vpop.f32.mrb[36].mxu1  ;;  %v2508_v59 = vpop.f32.mrb[36].mxu0 }
 0x1ad   : > { %v2597_v63 = vpop.f32.mrb[37].mxu1  ;;  %v2509_v0 = vpop.f32.mrb[37].mxu0 }
 0x1ae   : > { %v2598_v1 = vadd.f32 %v2597_v63, %v2596_v39  ;;  %v2599_v4 = vpop.f32.mrb[38].mxu1  ;;  %v3511_v62 = vadd.f32 %v2509_v0, %v2508_v59  ;;  %v2511_v9 = vpop.f32.mrb[38].mxu0  ;;  %v3535_v59 = vld [vmem:[#allocation8] ss:$0 sm:$0xff] }
 0x1af   : > { %v2600_v3 = vpop.f32.mrb[39].mxu1  ;;  %v2512_v11 = vpop.f32.mrb[39].mxu0 }
 0x1b0   : > { %v2601_v12 = vadd.f32 %v2600_v3, %v2599_v4  ;;  %v3513_v13 = vadd.f32 %v2512_v11, %v2511_v9  ;;  %v3515_v17 = vadd.f32 %v2598_v1, %v2486_v61 }
 0x1b2   : > { %v3517_v46 = vadd.f32 %v2601_v12, %v2489_v5 }
 0x1b4   : > { %v2602_v51 = vpop.f32.mrb[40].mxu1  ;;  %v2514_v18 = vpop.f32.mrb[40].mxu0 }
 0x1b5   : > { %v2603_v19 = vpop.f32.mrb[41].mxu1  ;;  %v2515_v21 = vpop.f32.mrb[41].mxu0 }
 0x1b6   : > { %v2604_v10 = vadd.f32 %v2603_v19, %v2602_v51  ;;  %v2605_v28 = vpop.f32.mrb[42].mxu1  ;;  %v3519_v15 = vadd.f32 %v2515_v21, %v2514_v18  ;;  %v2517_v29 = vpop.f32.mrb[42].mxu0 }
 0x1b7   : > { %v2606_v30 = vpop.f32.mrb[43].mxu1  ;;  %v2518_v31 = vpop.f32.mrb[43].mxu0 }
 0x1b8   : > { %v2607_v35 = vadd.f32 %v2606_v30, %v2605_v28  ;;  %v3521_v36 = vadd.f32 %v2518_v31, %v2517_v29  ;;  %v3523_v37 = vadd.f32 %v2604_v10, %v2492_v16 }
 0x1ba   : > { %v3525_v61 = vadd.f32 %v2607_v35, %v2495_v23 }
 0x1bc   : > { %v2608_v5 = vpop.f32.mrb[44].mxu1  ;;  %v2520_v40 = vpop.f32.mrb[44].mxu0 }
 0x1bd   : > { %v2609_v22 = vpop.f32.mrb[45].mxu1  ;;  %v2521_v44 = vpop.f32.mrb[45].mxu0 }
 0x1be   : > { %v2610_v27 = vadd.f32 %v2609_v22, %v2608_v5  ;;  %v2611_v45 = vpop.f32.mrb[46].mxu1  ;;  %v3527_v47 = vadd.f32 %v2521_v44, %v2520_v40  ;;  %v2523_v48 = vpop.f32.mrb[46].mxu0 }
 0x1bf   : > { %v2612_v50 = vpop.f32.mrb[47].mxu1  ;;  %v2524_v54 = vpop.f32.mrb[47].mxu0 }
 0x1c0   : > { %v2613_v55 = vadd.f32 %v2612_v50, %v2611_v45  ;;  %v3529_v56 = vadd.f32 %v2524_v54, %v2523_v48  ;;  %v3531_v39 = vadd.f32 %v2610_v27, %v2498_v33 }
 0x1c2   : > { %v3533_v16 = vadd.f32 %v2613_v55, %v2501_v41 }
 0x1c4   : > { %v2614_v23 = vpop.f32.mrb[48].mxu1  ;;  %v2704_v63 = vpop.f32.mrb[48].mxu0 }
 0x1c5   : > { %v1537_v0 = vadd.f32 %v2704_v63, %v3491_v6  ;;  %v2615_v1 = vpop.f32.mrb[49].mxu1  ;;  %v1528_v4 = vpop.f32.mrb[49].mxu0 }
 0x1c6   : > { %v2616_v9 = vadd.f32 %v2615_v1, %v2614_v23  ;;  %v1529_v3 = vadd.f32 %v1528_v4, %v3487_v52  ;;  %v2617_v11 = vpop.f32.mrb[50].mxu1  ;;  %v2705_v12 = vpop.f32.mrb[50].mxu0 }
 0x1c7   : > { %v1657_v51 = vadd.f32 %v3535_v59, %v1537_v0  ;;  %v1540_v33 = vadd.f32 %v2705_v12, %v3493_v7  ;;  %v2618_v41 = vpop.f32.mrb[51].mxu1  ;;  %v1531_v18 = vpop.f32.mrb[51].mxu0 }
 0x1c8   : > { %v1655_v19 = vadd.f32 %v3535_v59, %v1529_v3  ;;  %v2619_v21 = vadd.f32 %v2618_v41, %v2617_v11  ;;  %v1532_v10 = vadd.f32 %v1531_v18, %v3489_v53  ;;  %v3544_v6 = vadd.f32 %v2616_v9, %v3503_v49 }
 0x1c9   : > { %vm1756_vm0 = vcmp.ge.f32.partialorder %v1657_v51, 0.0  ;;  %v1788_v28 = vmul.f32 0.1, %v1657_v51  ;;  %v1658_v52 = vadd.f32 %v3535_v59, %v1540_v33 }
 0x1ca   : > { %vm1754_vm1 = vcmp.ge.f32.partialorder %v1655_v19, 0.0  ;;  %v1786_v29 = vmul.f32 0.1, %v1655_v19  ;;  %v1656_v30 = vadd.f32 %v3535_v59, %v1532_v10  ;;  %v3550_v7 = vadd.f32 %v2619_v21, %v3505_v57 }
 0x1cb   : > { %vm1757_vm2 = vcmp.ge.f32.partialorder %v1658_v52, 0.0  ;;  %v1789_v31 = vmul.f32 0.1, %v1658_v52  ;;  %v1820_v49 = vsel %vm1756_vm0, %v1657_v51, %v1788_v28 }
 0x1cc   : > { %vm1755_vm3 = vcmp.ge.f32.partialorder %v1656_v30, 0.0  ;;  %v1787_v35 = vmul.f32 0.1, %v1656_v30  ;;  %v2620_v53 = vpop.f32.mrb[52].mxu1  ;;  %v2708_v5 = vpop.f32.mrb[52].mxu0  ;;  %v1818_v40 = vsel %vm1754_vm1, %v1655_v19, %v1786_v29 }
 0x1cd   : > { %v1821_v22 = vsel %vm1757_vm2, %v1658_v52, %v1789_v31  ;;  %v1553_v44 = vadd.f32 %v2708_v5, %v3499_v42  ;;  %v2621_v27 = vpop.f32.mrb[53].mxu1  ;;  %v1544_v45 = vpop.f32.mrb[53].mxu0 }
 0x1ce   : > { %v2351_v48 = vpack.c.bf16 %v1821_v22, %v1820_v49  ;;  %v1819_v50 = vsel %vm1755_vm3, %v1656_v30, %v1787_v35  ;;  %v2622_v54 = vadd.f32 %v2621_v27, %v2620_v53  ;;  %v1545_v55 = vadd.f32 %v1544_v45, %v3495_v24  ;;  %v2623_v57 = vpop.f32.mrb[54].mxu1  ;;  %v2709_v23 = vpop.f32.mrb[54].mxu0 }
 0x1cf   : > { %v2346_v63 = vpack.c.bf16 %v1819_v50, %v1818_v40  ;;  %v1661_v0 = vadd.f32 %v3535_v59, %v1553_v44  ;;  %v1556_v1 = vadd.f32 %v2709_v23, %v3501_v43  ;;  %v2624_v4 = vpop.f32.mrb[55].mxu1  ;;  %v1547_v9 = vpop.f32.mrb[55].mxu0 }
 0x1d0   : > { %2423 = vst [vmem:[%s3556_s22 + $0x8] sm:$0xff] %v2351_v48   ;;  %v1659_v42 = vadd.f32 %v3535_v59, %v1545_v55  ;;  %v2625_v3 = vadd.f32 %v2624_v4, %v2623_v57  ;;  %v1548_v11 = vadd.f32 %v1547_v9, %v3497_v25  ;;  %v3562_v24 = vadd.f32 %v2622_v54, %v3511_v62 }
 0x1d1   : > { %2347 = vst [vmem:[%s3556_s22] sm:$0xff] %v2346_v63   ;;  %vm1760_vm4 = vcmp.ge.f32.partialorder %v1661_v0, 0.0  ;;  %v1792_v12 = vmul.f32 0.1, %v1661_v0  ;;  %v1662_v43 = vadd.f32 %v3535_v59, %v1556_v1 }
 0x1d2   : > { %vm1758_vm5 = vcmp.ge.f32.partialorder %v1659_v42, 0.0  ;;  %v1790_v51 = vmul.f32 0.1, %v1659_v42  ;;  %v1660_v33 = vadd.f32 %v3535_v59, %v1548_v11  ;;  %v3568_v41 = vadd.f32 %v2625_v3, %v3513_v13 }
 0x1d3   : > { %vm1761_vm6 = vcmp.ge.f32.partialorder %v1662_v43, 0.0  ;;  %v1793_v18 = vmul.f32 0.1, %v1662_v43  ;;  %v1824_v62 = vsel %vm1760_vm4, %v1661_v0, %v1792_v12 }
 0x1d4   : > { %vm1759_vm7 = vcmp.ge.f32.partialorder %v1660_v33, 0.0  ;;  %v1791_v19 = vmul.f32 0.1, %v1660_v33  ;;  %v2626_v25 = vpop.f32.mrb[56].mxu1  ;;  %v2712_v21 = vpop.f32.mrb[56].mxu0  ;;  %v1822_v10 = vsel %vm1758_vm5, %v1659_v42, %v1790_v51 }
 0x1d5   : > { %v1825_v28 = vsel %vm1761_vm6, %v1662_v43, %v1793_v18  ;;  %v1569_v52 = vadd.f32 %v2712_v21, %v3515_v17  ;;  %v2627_v29 = vpop.f32.mrb[57].mxu1  ;;  %v1560_v30 = vpop.f32.mrb[57].mxu0 }
 0x1d6   : > { %v2361_v31 = vpack.c.bf16 %v1825_v28, %v1824_v62  ;;  %v1823_v35 = vsel %vm1759_vm7, %v1660_v33, %v1791_v19  ;;  %v2628_v53 = vadd.f32 %v2627_v29, %v2626_v25  ;;  %v1561_v13 = vadd.f32 %v1560_v30, %v3507_v58  ;;  %v2629_v5 = vpop.f32.mrb[58].mxu1  ;;  %v2713_v49 = vpop.f32.mrb[58].mxu0 }
 0x1d7   : > { %v2356_v40 = vpack.c.bf16 %v1823_v35, %v1822_v10  ;;  %v1665_v22 = vadd.f32 %v3535_v59, %v1569_v52  ;;  %v1572_v44 = vadd.f32 %v2713_v49, %v3517_v46  ;;  %v2630_v27 = vpop.f32.mrb[59].mxu1  ;;  %v1563_v45 = vpop.f32.mrb[59].mxu0 }
 0x1d8   : > { %2425 = vst [vmem:[%s3556_s22 + $0x18] sm:$0xff] %v2361_v31   ;;  %v1663_v17 = vadd.f32 %v3535_v59, %v1561_v13  ;;  %v2631_v48 = vadd.f32 %v2630_v27, %v2629_v5  ;;  %v1564_v50 = vadd.f32 %v1563_v45, %v3509_v34  ;;  %v3578_v54 = vadd.f32 %v2628_v53, %v3519_v15 }
 0x1d9   : > { %2424 = vst [vmem:[%s3556_s22 + $0x10] sm:$0xff] %v2356_v40   ;;  %vm1764_vm8 = vcmp.ge.f32.partialorder %v1665_v22, 0.0  ;;  %v1796_v58 = vmul.f32 0.1, %v1665_v22  ;;  %v1666_v55 = vadd.f32 %v3535_v59, %v1572_v44 }
 0x1da   : > { %vm1762_vm9 = vcmp.ge.f32.partialorder %v1663_v17, 0.0  ;;  %v1794_v57 = vmul.f32 0.1, %v1663_v17  ;;  %v1664_v46 = vadd.f32 %v3535_v59, %v1564_v50  ;;  %v3584_v23 = vadd.f32 %v2631_v48, %v3521_v36 }
 0x1db   : > { %vm1765_vm10 = vcmp.ge.f32.partialorder %v1666_v55, 0.0  ;;  %v1797_v63 = vmul.f32 0.1, %v1666_v55  ;;  %v1828_v15 = vsel %vm1764_vm8, %v1665_v22, %v1796_v58 }
 0x1dc   : > { %vm1763_vm11 = vcmp.ge.f32.partialorder %v1664_v46, 0.0  ;;  %v1795_v0 = vmul.f32 0.1, %v1664_v46  ;;  %v2632_v34 = vpop.f32.mrb[60].mxu1  ;;  %v2716_v1 = vpop.f32.mrb[60].mxu0  ;;  %v1826_v4 = vsel %vm1762_vm9, %v1663_v17, %v1794_v57 }
 0x1dd   : > { %v1829_v9 = vsel %vm1765_vm10, %v1666_v55, %v1797_v63  ;;  %v1585_v42 = vadd.f32 %v2716_v1, %v3531_v39  ;;  %v2633_v3 = vpop.f32.mrb[61].mxu1  ;;  %v1576_v11 = vpop.f32.mrb[61].mxu0 }
 0x1de   : > { %v2371_v12 = vpack.c.bf16 %v1829_v9, %v1828_v15  ;;  %v1827_v43 = vsel %vm1763_vm11, %v1664_v46, %v1795_v0  ;;  %v2634_v51 = vadd.f32 %v2633_v3, %v2632_v34  ;;  %v1577_v36 = vadd.f32 %v1576_v11, %v3523_v37  ;;  %v2635_v33 = vpop.f32.mrb[62].mxu1  ;;  %v2717_v18 = vpop.f32.mrb[62].mxu0 }
 0x1df   : > { %v2366_v19 = vpack.c.bf16 %v1827_v43, %v1826_v4  ;;  %v1669_v25 = vadd.f32 %v3535_v59, %v1585_v42  ;;  %v1588_v21 = vadd.f32 %v2717_v18, %v3533_v16  ;;  %v2636_v62 = vpop.f32.mrb[63].mxu1  ;;  %v1579_v10 = vpop.f32.mrb[63].mxu0 }
 0x1e0   : > { %2427 = vst [vmem:[%s3556_s22 + $0x28] sm:$0xff] %v2371_v12   ;;  %v1667_v39 = vadd.f32 %v3535_v59, %v1577_v36  ;;  %v2637_v28 = vadd.f32 %v2636_v62, %v2635_v33  ;;  %v1580_v52 = vadd.f32 %v1579_v10, %v3525_v61  ;;  %v1456_v29 = vadd.f32 %v2634_v51, %v3527_v47 }
 0x1e1   : > { %2426 = vst [vmem:[%s3556_s22 + $0x20] sm:$0xff] %v2366_v19   ;;  %vm1768_vm12 = vcmp.ge.f32.partialorder %v1669_v25, 0.0  ;;  %v1800_v37 = vmul.f32 0.1, %v1669_v25  ;;  %v1670_v30 = vadd.f32 %v3535_v59, %v1588_v21 }
 0x1e2   : > { %vm1766_vm13 = vcmp.ge.f32.partialorder %v1667_v39, 0.0  ;;  %v1798_v31 = vmul.f32 0.1, %v1667_v39  ;;  %v1668_v35 = vadd.f32 %v3535_v59, %v1580_v52  ;;  %v1459_v16 = vadd.f32 %v2637_v28, %v3529_v56 }
 0x1e3   : > { %vm1769_vm14 = vcmp.ge.f32.partialorder %v1670_v30, 0.0  ;;  %v1801_v53 = vmul.f32 0.1, %v1670_v30  ;;  %v1832_v61 = vsel %vm1768_vm12, %v1669_v25, %v1800_v37 }
 0x1e4   : > { %vm1767_vm15 = vcmp.ge.f32.partialorder %v1668_v35, 0.0  ;;  %v1799_v13 = vmul.f32 0.1, %v1668_v35  ;;  %v2638_v5 = vpop.f32.mrb[64].mxu1  ;;  %v2720_v49 = vpop.f32.mrb[64].mxu0  ;;  %v1830_v40 = vsel %vm1766_vm13, %v1667_v39, %v1798_v31 }
 0x1e5   : > { %v1833_v47 = vsel %vm1769_vm14, %v1670_v30, %v1801_v53  ;;  %v1601_v22 = vadd.f32 %v2720_v49, %v3562_v24  ;;  %v2639_v44 = vpop.f32.mrb[65].mxu1  ;;  %v1592_v27 = vpop.f32.mrb[65].mxu0 }
 0x1e6   : > { %v2381_v45 = vpack.c.bf16 %v1833_v47, %v1832_v61  ;;  %v1831_v17 = vsel %vm1767_vm15, %v1668_v35, %v1799_v13  ;;  %v2640_v48 = vadd.f32 %v2639_v44, %v2638_v5  ;;  %v1593_v56 = vadd.f32 %v1592_v27, %v3544_v6  ;;  %v2641_v50 = vpop.f32.mrb[66].mxu1  ;;  %v2721_v58 = vpop.f32.mrb[66].mxu0 }
 0x1e7   : > { %v2376_v55 = vpack.c.bf16 %v1831_v17, %v1830_v40  ;;  %v1673_v57 = vadd.f32 %v3535_v59, %v1601_v22  ;;  %v1604_v46 = vadd.f32 %v2721_v58, %v3568_v41  ;;  %v2642_v63 = vpop.f32.mrb[67].mxu1  ;;  %v1595_v0 = vpop.f32.mrb[67].mxu0 }
 0x1e8   : > { %2429 = vst [vmem:[%s3556_s22 + $0x38] sm:$0xff] %v2381_v45   ;;  %v1671_v24 = vadd.f32 %v3535_v59, %v1593_v56  ;;  %v2643_v34 = vadd.f32 %v2642_v63, %v2641_v50  ;;  %v1596_v1 = vadd.f32 %v1595_v0, %v3550_v7  ;;  %v1464_v15 = vadd.f32 %v2640_v48, %v3471_v60 }
 0x1e9   : > { %2428 = vst [vmem:[%s3556_s22 + $0x30] sm:$0xff] %v2376_v55   ;;  %vm1772_vm0 = vcmp.ge.f32.partialorder %v1673_v57, 0.0  ;;  %v1804_v6 = vmul.f32 0.1, %v1673_v57  ;;  %v1674_v4 = vadd.f32 %v3535_v59, %v1604_v46 }
 0x1ea   : > { %vm1770_vm1 = vcmp.ge.f32.partialorder %v1671_v24, 0.0  ;;  %v1802_v9 = vmul.f32 0.1, %v1671_v24  ;;  %v1672_v42 = vadd.f32 %v3535_v59, %v1596_v1  ;;  %v3610_v41 = vadd.f32 %v2643_v34, %v3473_v2 }
 0x1eb   : > { %vm1773_vm2 = vcmp.ge.f32.partialorder %v1674_v4, 0.0  ;;  %v1805_v3 = vmul.f32 0.1, %v1674_v4  ;;  %v1836_v43 = vsel %vm1772_vm0, %v1673_v57, %v1804_v6 }
 0x1ec   : > { %vm1771_vm3 = vcmp.ge.f32.partialorder %v1672_v42, 0.0  ;;  %v1803_v11 = vmul.f32 0.1, %v1672_v42  ;;  %v2644_v12 = vpop.f32.mrb[68].mxu1  ;;  %v2724_v7 = vpop.f32.mrb[68].mxu0  ;;  %v1834_v60 = vsel %vm1770_vm1, %v1671_v24, %v1802_v9 }
 0x1ed   : > { %v1837_v51 = vsel %vm1773_vm2, %v1674_v4, %v1805_v3  ;;  %v1617_v36 = vadd.f32 %v2724_v7, %v1456_v29  ;;  %v2645_v33 = vpop.f32.mrb[69].mxu1  ;;  %v1608_v18 = vpop.f32.mrb[69].mxu0 }
 0x1ee   : > { %v2391_v19 = vpack.c.bf16 %v1837_v51, %v1836_v43  ;;  %v1835_v25 = vsel %vm1771_vm3, %v1672_v42, %v1803_v11  ;;  %v2646_v21 = vadd.f32 %v2645_v33, %v2644_v12  ;;  %v1609_v2 = vadd.f32 %v1608_v18, %v3578_v54  ;;  %v2647_v62 = vpop.f32.mrb[70].mxu1  ;;  %v2725_v10 = vpop.f32.mrb[70].mxu0 }
 0x1ef   : > { %v2386_v39 = vpack.c.bf16 %v1835_v25, %v1834_v60  ;;  %v1677_v28 = vadd.f32 %v3535_v59, %v1617_v36  ;;  %v1620_v52 = vadd.f32 %v2725_v10, %v1459_v16  ;;  %v2648_v37 = vpop.f32.mrb[71].mxu1  ;;  %v1611_v30 = vpop.f32.mrb[71].mxu0 }
 0x1f0   : > { %2431 = vst [vmem:[%s3556_s22 + $0x48] sm:$0xff] %v2391_v19   ;;  %v1675_v31 = vadd.f32 %v3535_v59, %v1609_v2  ;;  %v2649_v29 = vadd.f32 %v2648_v37, %v2647_v62  ;;  %v1612_v35 = vadd.f32 %v1611_v30, %v3584_v23  ;;  %v1472_v53 = vadd.f32 %v2646_v21, %v3475_v8 }
 0x1f1   : > { %2430 = vst [vmem:[%s3556_s22 + $0x40] sm:$0xff] %v2386_v39   ;;  %vm1776_vm4 = vcmp.ge.f32.partialorder %v1677_v28, 0.0  ;;  %v1808_v13 = vmul.f32 0.1, %v1677_v28  ;;  %v1678_v54 = vadd.f32 %v3535_v59, %v1620_v52 }
 0x1f2   : > { %vm1774_vm5 = vcmp.ge.f32.partialorder %v1675_v31, 0.0  ;;  %v1806_v5 = vmul.f32 0.1, %v1675_v31  ;;  %v1676_v49 = vadd.f32 %v3535_v59, %v1612_v35  ;;  %v1475_v16 = vadd.f32 %v2649_v29, %v3477_v14 }
 0x1f3   : > { %vm1777_vm6 = vcmp.ge.f32.partialorder %v1678_v54, 0.0  ;;  %v1809_v61 = vmul.f32 0.1, %v1678_v54  ;;  %v1840_v23 = vsel %vm1776_vm4, %v1677_v28, %v1808_v13 }
 0x1f4   : > { %vm1775_vm7 = vcmp.ge.f32.partialorder %v1676_v49, 0.0  ;;  %v1807_v40 = vmul.f32 0.1, %v1676_v49  ;;  %v2650_v47 = vpop.f32.mrb[72].mxu1  ;;  %v2728_v22 = vpop.f32.mrb[72].mxu0  ;;  %v1838_v44 = vsel %vm1774_vm5, %v1675_v31, %v1806_v5 }
 0x1f5   : > { %v1841_v8 = vsel %vm1777_vm6, %v1678_v54, %v1809_v61  ;;  %v1633_v27 = vadd.f32 %v2728_v22, %v1472_v53  ;;  %v2651_v45 = vpop.f32.mrb[73].mxu1  ;;  %v1624_v17 = vpop.f32.mrb[73].mxu0 }
 0x1f6   : > { %v2401_v48 = vpack.c.bf16 %v1841_v8, %v1840_v23  ;;  %v1839_v56 = vsel %vm1775_vm7, %v1676_v49, %v1807_v40  ;;  %v2652_v50 = vadd.f32 %v2651_v45, %v2650_v47  ;;  %v1625_v58 = vadd.f32 %v1624_v17, %v1464_v15  ;;  %v2653_v55 = vpop.f32.mrb[74].mxu1  ;;  %v2729_v14 = vpop.f32.mrb[74].mxu0 }
 0x1f7   : > { %v2396_v57 = vpack.c.bf16 %v1839_v56, %v1838_v44  ;;  %v1681_v46 = vadd.f32 %v3535_v59, %v1633_v27  ;;  %v1636_v63 = vadd.f32 %v2729_v14, %v1475_v16  ;;  %v2654_v0 = vpop.f32.mrb[75].mxu1  ;;  %v1627_v24 = vpop.f32.mrb[75].mxu0 }
 0x1f8   : > { %2433 = vst [vmem:[%s3556_s22 + $0x58] sm:$0xff] %v2401_v48   ;;  %v1679_v34 = vadd.f32 %v3535_v59, %v1625_v58  ;;  %v2655_v1 = vadd.f32 %v2654_v0, %v2653_v55  ;;  %v1628_v6 = vadd.f32 %v1627_v24, %v3610_v41  ;;  %v1480_v4 = vadd.f32 %v2652_v50, %v3479_v20 }
 0x1f9   : > { %2432 = vst [vmem:[%s3556_s22 + $0x50] sm:$0xff] %v2396_v57   ;;  %vm1780_vm8 = vcmp.ge.f32.partialorder %v1681_v46, 0.0  ;;  %v1812_v9 = vmul.f32 0.1, %v1681_v46  ;;  %v1682_v15 = vadd.f32 %v3535_v59, %v1636_v63 }
 0x1fa   : > { %vm1778_vm9 = vcmp.ge.f32.partialorder %v1679_v34, 0.0  ;;  %v1810_v42 = vmul.f32 0.1, %v1679_v34  ;;  %v1680_v3 = vadd.f32 %v3535_v59, %v1628_v6  ;;  %v1483_v11 = vadd.f32 %v2655_v1, %v3481_v26 }
 0x1fb   : > { %vm1781_vm10 = vcmp.ge.f32.partialorder %v1682_v15, 0.0  ;;  %v1813_v12 = vmul.f32 0.1, %v1682_v15  ;;  %v1844_v60 = vsel %vm1780_vm8, %v1681_v46, %v1812_v9 }
 0x1fc   : > { %vm1779_vm11 = vcmp.ge.f32.partialorder %v1680_v3, 0.0  ;;  %v1811_v7 = vmul.f32 0.1, %v1680_v3  ;;  %v2656_v43 = vpop.f32.mrb[76].mxu1  ;;  %v2732_v41 = vpop.f32.mrb[76].mxu0  ;;  %v1842_v20 = vsel %vm1778_vm9, %v1679_v34, %v1810_v42 }
 0x1fd   : > { %v1845_v51 = vsel %vm1781_vm10, %v1682_v15, %v1813_v12  ;;  %v2657_v36 = vpop.f32.mrb[77].mxu1  ;;  %v1640_v33 = vpop.f32.mrb[77].mxu0 }
 0x1fe   : > { %v2411_v18 = vpack.c.bf16 %v1845_v51, %v1844_v60  ;;  %v1843_v19 = vsel %vm1779_vm11, %v1680_v3, %v1811_v7  ;;  %v2658_v25 = vadd.f32 %v2657_v36, %v2656_v43  ;;  %v1641_v21 = vadd.f32 %v1640_v33, %v1480_v4  ;;  %v2659_v2 = vpop.f32.mrb[78].mxu1  ;;  %v2733_v62 = vpop.f32.mrb[78].mxu0 }
 0x1ff   : > { %v2406_v26 = vpack.c.bf16 %v1843_v19, %v1842_v20  ;;  %v2660_v10 = vpop.f32.mrb[79].mxu1  ;;  %v1643_v39 = vpop.f32.mrb[79].mxu0 }
 0x200   : > { %2435 = vst [vmem:[%s3556_s22 + $0x68] sm:$0xff] %v2411_v18   ;;  %v1488_v28 = vadd.f32 %v2658_v25, %v3483_v32  ;;  %v1683_v52 = vadd.f32 %v3535_v59, %v1641_v21  ;;  %v2661_v37 = vadd.f32 %v2660_v10, %v2659_v2  ;;  %v1644_v30 = vadd.f32 %v1643_v39, %v1483_v11 }
 0x201   : > { %2434 = vst [vmem:[%s3556_s22 + $0x60] sm:$0xff] %v2406_v26  }
 0x202   : > { %v1649_v31 = vadd.f32 %v2732_v41, %v1488_v28  ;;  %v1491_v29 = vadd.f32 %v2661_v37, %v3485_v38  ;;  %v1814_v35 = vmul.f32 0.1, %v1683_v52  ;;  %v1684_v53 = vadd.f32 %v3535_v59, %v1644_v30 }
 0x203   : > { %vm1782_vm12 = vcmp.ge.f32.partialorder %v1683_v52, 0.0 }
 0x204   : > { %v1685_v13 = vadd.f32 %v3535_v59, %v1649_v31  ;;  %v1652_v54 = vadd.f32 %v2733_v62, %v1491_v29  ;;  %vm1783_vm13 = vcmp.ge.f32.partialorder %v1684_v53, 0.0  ;;  %v1815_v32 = vmul.f32 0.1, %v1684_v53 }
 0x205   : > { %v1846_v16 = vsel %vm1782_vm12, %v1683_v52, %v1814_v35 }
 0x206   : > { %v1816_v5 = vmul.f32 0.1, %v1685_v13  ;;  %v1686_v49 = vadd.f32 %v3535_v59, %v1652_v54  ;;  %vm1784_vm14 = vcmp.ge.f32.partialorder %v1685_v13, 0.0  ;;  %v1847_v61 = vsel %vm1783_vm13, %v1684_v53, %v1815_v32 }
 0x207   : > { %v2416_v40 = vpack.c.bf16 %v1847_v61, %v1846_v16 }
 0x208   : > { %vm1785_vm15 = vcmp.ge.f32.partialorder %v1686_v49, 0.0  ;;  %v1817_v38 = vmul.f32 0.1, %v1686_v49  ;;  %v1848_v47 = vsel %vm1784_vm14, %v1685_v13, %v1816_v5 }
 0x209   : > { %2436 = vst [vmem:[%s3556_s22 + $0x70] sm:$0xff] %v2416_v40  }
 0x20a   : > { %v1849_v22 = vsel %vm1785_vm15, %v1686_v49, %v1817_v38 }
 0x20b   : > { %v2421_v59 = vpack.c.bf16 %v1849_v22, %v1848_v47 }
 0x20d   : > { %2437 = vst [vmem:[%s3556_s22 + $0x78] sm:$0xff] %v2421_v59  }
 0x20e   : > { %3093 = shalt.err (!%p3090_p5)
}
 0x20f   : > { %s3094_s10 = scalar_lea.hbm %s3645_s9, 2048  ;;  %s3098_s29 = scalar_lea.hbm %s3699_s3, 8192 }
 0x210   : > { %p3095_p9 = scmp.ne.s32.totalorder %s3645_s9, %s3094_s10  ;;  %p3099_p3 = scmp.lt.u32.totalorder %s3645_s9, %s3699_s3 }
 0x211   : > { %p3100_p7 = scmp.lt.u32.totalorder %s3098_s29, %s3094_s10  ;;  %p3102_p1 = scmp.lt.u32.totalorder %s3094_s10, %s3645_s9 }
 0x212   : > { %p3096_p12 = pnand %p3095_p9, %p3324_p8 }
 0x213   : > { %p3101_p10 = por %p3100_p7, %p3099_p3 }
 0x214   : > { %p3097_p11 = pneg %p3096_p12 }
 0x215   : > { %p3103_p2 = por %p3102_p1, %p3101_p10 }
 0x217   : > { %p3104_p4 = pnand %p3103_p2, %p3097_p11 }
 0x219   : > { %3107 = shalt.err (!%p3104_p4)
}
 0x21a   : > { %s3176_s22 = smov 64   ;;  %s3177_s24 = smov 4  }
 0x21b   : > { %2763 = dma.vmem_to_hbm [thread:$0]  (%p3324_p8), %s3647_s30, 2048, %s3645_s9, %s2011_s15, %s3176_s22, %s3176_s22, %s3177_s24  }
 0x21c PF: > { %p2785_p6 = scmp.ge.s32.totalorder %s3166_s17, 2  ;;  %s2040_s7 = sand.u32 1, %s3146_s12  }
 0x21d   : > { %p3716_p13 = scmp.ne.s32.totalorder %s3707_s23, 0  ;;  %s2041_s26 = scalar_lea.sflag [#allocation5], %s2040_s7 }
 0x21f   : > { %p2777_p0 = pnand %p2785_p6, %p3716_p13 }
 0x221   : > { %3141 = dma.done.wait (!%p2777_p0), %s2041_s26, 2048  }
 0x222   : > { %3143 = vsyncadd (!%p2777_p0), %s2041_s26, 4294965248  ;;  %s20_s17 = sadd.s32 1, %s3166_s17   ;;  %s3717_s12 = smov %s3150_s13 }
 0x223   : > { %p17_p5 = scmp.ge.s32.totalorder %s20_s17, 6   ;;  %s3718_s13 = smov %s3154_s14 }
 0x224   : > { %s3719_s14 = smov %s3336_s4  ;;  %s3720_s15 = smov %s3162_s16 }
 0x225   : > { %s3721_s16 = smov %s3723_s18  ;;  %19 = sbr.rel (!%p17_p5) target bundleno = 7 (0x7), region = 95 }
 0x22c   :  { %2046 = vsyncpa [#allocation4], 1 }
 0x22d   :  { %2048 = vsyncpa [#allocation4 + $0x1], 1 }
 0x22e   :  { %2049 = vsyncpa [#allocation7], 1 }
 0x22f   :  { %2050 = vsyncpa [#allocation5], 1 }
 0x230   :  { %2052 = vsyncpa [#allocation5 + $0x1], 1 }

</bundles_post_ra>
